<compile_context>
chip_gen: v7x
topology: tpu7x:2x2x1
jax: 0.10.0
libtpu: 0.0.40
codegen_flags: <defaults>
</compile_context>

<pallas_src>
import functools

import jax
import jax.numpy as jnp
from jax import lax
from jax.experimental import pallas as pl
from jax.experimental.pallas import tpu as pltpu


_LN_EPS = 1e-5
_INV_SQRT2 = 0.7071067811865476


def _erf(x):
    # Abramowitz & Stegun 7.1.26 rational approximation, |err| < 1.5e-7.
    # Elementwise only (VPU + one EUP exp) -> always lowers on TPU Mosaic.
    z = jnp.maximum(x, -x)
    t = 1.0 / (1.0 + 0.3275911 * z)
    poly = ((((1.061405429 * t - 1.453152027) * t + 1.421413741) * t
             - 0.284496736) * t + 0.254829592) * t
    y = 1.0 - poly * jnp.exp(-z * z)
    return jnp.where(x >= 0.0, y, -y)


def _gelu_exact(x):
    # PyTorch nn.GELU() default ('none' approximation): x * Phi(x).
    return 0.5 * x * (1.0 + _erf(x * _INV_SQRT2))


def mapping_net_kernel(x_ref, g_ref, b_ref, w1_ref, b1_ref, w2_ref, b2_ref,
                       o_ref):
    # x_ref: (tm, C) tile of tokens (batch and sequence folded into rows).
    x = x_ref[...].astype(jnp.float32)

    # ----- LayerNorm over the feature (lane) dim -----
    mean = jnp.mean(x, axis=-1, keepdims=True)
    xc = x - mean
    var = jnp.mean(xc * xc, axis=-1, keepdims=True)
    xn = xc * lax.rsqrt(var + _LN_EPS) * g_ref[...] + b_ref[...]

    # ----- Linear(dim -> 512) + exact GELU (MXU matmul, f32 accumulation) -----
    h = jnp.dot(xn, w1_ref[...], preferred_element_type=jnp.float32) + b1_ref[...]
    h = _gelu_exact(h)

    # ----- Linear(512 -> select_channel), lane-padded to 128 for dense vst ----
    y = jnp.dot(h, w2_ref[...], preferred_element_type=jnp.float32) + b2_ref[...]
    o_ref[...] = y.astype(o_ref.dtype)


def _round_up(v, m):
    return (v + m - 1) // m * m


@functools.partial(jax.jit, static_argnames=("block_rows",))
def mapping_net_forward(x, params, block_rows=256):
    """MappingNet.forward: x (B, dim, L) -> (B, select_channel, L)."""
    gamma, beta, w1, b1, w2, b2 = params
    B, C, L = x.shape
    H = w1.shape[1]
    S = w2.shape[1]

    # Fold batch and sequence into one token-row axis.
    M = B * L
    tm = min(block_rows, _round_up(M, 8))
    m_pad = _round_up(M, tm)
    xt = jnp.transpose(x, (0, 2, 1)).reshape(M, C)          # wrapper layout plumbing
    if m_pad != M:
        xt = jnp.pad(xt, ((0, m_pad - M), (0, 0)))          # zero rows are harmless

    # Pad the tiny output projection up to a full 128-lane slab so the final
    # store is an unmasked, lane-dense vst; wrapper slices the real channels.
    s_pad = _round_up(S, 128)
    w2p = jnp.pad(w2, ((0, 0), (0, s_pad - S)))
    b2p = jnp.pad(b2, ((0, s_pad - S),))

    out = pl.pallas_call(
        mapping_net_kernel,
        out_shape=jax.ShapeDtypeStruct((m_pad, s_pad), x.dtype),
        grid_spec=pltpu.PrefetchScalarGridSpec(
            num_scalar_prefetch=0,
            grid=(m_pad // tm,),
            in_specs=[
                pl.BlockSpec((tm, C), lambda i: (i, 0)),     # x row tile
                pl.BlockSpec((1, C), lambda i: (0, 0)),      # LN gamma
                pl.BlockSpec((1, C), lambda i: (0, 0)),      # LN beta
                pl.BlockSpec((C, H), lambda i: (0, 0)),      # W1 (resident)
                pl.BlockSpec((1, H), lambda i: (0, 0)),      # b1
                pl.BlockSpec((H, s_pad), lambda i: (0, 0)),  # W2 (lane-padded)
                pl.BlockSpec((1, s_pad), lambda i: (0, 0)),  # b2
            ],
            out_specs=pl.BlockSpec((tm, s_pad), lambda i: (i, 0)),
        ),
        compiler_params=pltpu.CompilerParams(
            dimension_semantics=("parallel",),
        ),
    )(xt, gamma.reshape(1, C), beta.reshape(1, C),
      w1, b1.reshape(1, H), w2p, b2p.reshape(1, s_pad))

    y = out[:M, :S].reshape(B, L, S)
    return jnp.transpose(y, (0, 2, 1))


def mapping_net_reference(x, params):
    """Pure-JAX reference of MappingNet.forward (for a correctness smoke test)."""
    gamma, beta, w1, b1, w2, b2 = params
    xt = jnp.transpose(x, (0, 2, 1))
    mean = jnp.mean(xt, axis=-1, keepdims=True)
    var = jnp.mean((xt - mean) ** 2, axis=-1, keepdims=True)
    xn = (xt - mean) / jnp.sqrt(var + _LN_EPS) * gamma + beta
    h = xn @ w1 + b1
    h = 0.5 * h * (1.0 + jax.scipy.special.erf(h * _INV_SQRT2))
    y = h @ w2 + b2
    return jnp.transpose(y, (0, 2, 1))


def init_params(key, dim=512, hidden=512, select_channel=4):
    """PyTorch-style init: LN(gamma=1, beta=0); Linear U(-1/sqrt(fan_in), +)."""
    k1, k2, k3, k4 = jax.random.split(key, 4)
    gamma = jnp.ones((dim,), jnp.float32)
    beta = jnp.zeros((dim,), jnp.float32)
    s1 = 1.0 / float(dim) ** 0.5
    w1 = jax.random.uniform(k1, (dim, hidden), jnp.float32, -s1, s1)
    b1 = jax.random.uniform(k2, (hidden,), jnp.float32, -s1, s1)
    s2 = 1.0 / float(hidden) ** 0.5
    w2 = jax.random.uniform(k3, (hidden, select_channel), jnp.float32, -s2, s2)
    b2 = jax.random.uniform(k4, (select_channel,), jnp.float32, -s2, s2)
    return gamma, beta, w1, b1, w2, b2


if __name__ == "__main__":
    # Shapes implied by the module: dim=512 features, select_channel=4,
    # small batch=2 and sequence length=16.  Input layout is (B, dim, L).
    B, DIM, L = 2, 512, 16
    SELECT_CHANNEL = 4

    key = jax.random.PRNGKey(0)
    kx, kp = jax.random.split(key)
    x = jax.random.normal(kx, (B, DIM, L), dtype=jnp.float32)
    params = init_params(kp, dim=DIM, hidden=512, select_channel=SELECT_CHANNEL)

    out = mapping_net_forward(x, params)
    out = jax.block_until_ready(out)
    assert out.shape == (B, SELECT_CHANNEL, L), out.shape

    ref = jax.block_until_ready(mapping_net_reference(x, params))
    max_err = float(jnp.max(jnp.abs(out - ref)))
    # Loose tolerance: TPU f32 matmul default precision differs between the
    # Mosaic kernel and the XLA reference (bf16-pass accumulation order).
    assert jnp.allclose(out, ref, atol=2e-2, rtol=2e-2), max_err

    print("KERNEL_OK")
</pallas_src>

<mosaic_0001>
module attributes {stable_mosaic.version = 11 : i64} {
  func.func @mapping_net_kernel(%arg0: i32, %arg1: memref<32x512xf32, #tpu.memory_space<vmem>>, %arg2: memref<1x512xf32, #tpu.memory_space<vmem>>, %arg3: memref<1x512xf32, #tpu.memory_space<vmem>>, %arg4: memref<512x512xf32, #tpu.memory_space<vmem>>, %arg5: memref<1x512xf32, #tpu.memory_space<vmem>>, %arg6: memref<512x128xf32, #tpu.memory_space<vmem>>, %arg7: memref<1x128xf32, #tpu.memory_space<vmem>>, %arg8: memref<32x128xf32, #tpu.memory_space<vmem>>) attributes {dimension_semantics = [#tpu.dimension_semantics<parallel>], iteration_bounds = array<i64: 1>, scalar_prefetch = 0 : i64, scratch_operands = 0 : i64, tpu.core_type = #tpu.core_type<tc>, window_params = [{transform_indices = @transform_0, window_bounds = array<i64: 32, 512>}, {pipeline_mode = #tpu.pipeline_mode<synchronous>, transform_indices = @transform_1, window_bounds = array<i64: 1, 512>}, {pipeline_mode = #tpu.pipeline_mode<synchronous>, transform_indices = @transform_2, window_bounds = array<i64: 1, 512>}, {pipeline_mode = #tpu.pipeline_mode<synchronous>, transform_indices = @transform_3, window_bounds = array<i64: 512, 512>}, {pipeline_mode = #tpu.pipeline_mode<synchronous>, transform_indices = @transform_4, window_bounds = array<i64: 1, 512>}, {pipeline_mode = #tpu.pipeline_mode<synchronous>, transform_indices = @transform_5, window_bounds = array<i64: 512, 128>}, {pipeline_mode = #tpu.pipeline_mode<synchronous>, transform_indices = @transform_6, window_bounds = array<i64: 1, 128>}, {transform_indices = @transform_7, window_bounds = array<i64: 32, 128>}]} {
    %c0 = arith.constant 0 : index
    %c0_0 = arith.constant 0 : index
    %0 = vector.load %arg1[%c0, %c0_0] : memref<32x512xf32, #tpu.memory_space<vmem>>, vector<32x512xf32>
    %cst = arith.constant dense<0.000000e+00> : vector<32xf32>
    %1 = vector.multi_reduction <add>, %0, %cst [1] : vector<32x512xf32> to vector<32xf32>
    %2 = vector.shape_cast %1 : vector<32xf32> to vector<32x1xf32>
    %cst_1 = arith.constant 5.120000e+02 : f32
    %3 = vector.broadcast %cst_1 : f32 to vector<32x1xf32>
    %4 = arith.divf %2, %3 : vector<32x1xf32>
    %5 = vector.broadcast %4 : vector<32x1xf32> to vector<32x512xf32>
    %6 = arith.subf %0, %5 : vector<32x512xf32>
    %7 = arith.mulf %6, %6 : vector<32x512xf32>
    %cst_2 = arith.constant dense<0.000000e+00> : vector<32xf32>
    %8 = vector.multi_reduction <add>, %7, %cst_2 [1] : vector<32x512xf32> to vector<32xf32>
    %9 = vector.shape_cast %8 : vector<32xf32> to vector<32x1xf32>
    %cst_3 = arith.constant 5.120000e+02 : f32
    %10 = vector.broadcast %cst_3 : f32 to vector<32x1xf32>
    %11 = arith.divf %9, %10 : vector<32x1xf32>
    %cst_4 = arith.constant 9.99999974E-6 : f32
    %12 = vector.broadcast %cst_4 : f32 to vector<32x1xf32>
    %13 = arith.addf %11, %12 : vector<32x1xf32>
    %14 = math.rsqrt %13 : vector<32x1xf32>
    %15 = vector.broadcast %14 : vector<32x1xf32> to vector<32x512xf32>
    %16 = arith.mulf %6, %15 : vector<32x512xf32>
    %c0_5 = arith.constant 0 : index
    %c0_6 = arith.constant 0 : index
    %17 = vector.load %arg2[%c0_5, %c0_6] : memref<1x512xf32, #tpu.memory_space<vmem>>, vector<1x512xf32>
    %18 = vector.broadcast %17 : vector<1x512xf32> to vector<32x512xf32>
    %19 = arith.mulf %16, %18 : vector<32x512xf32>
    %c0_7 = arith.constant 0 : index
    %c0_8 = arith.constant 0 : index
    %20 = vector.load %arg3[%c0_7, %c0_8] : memref<1x512xf32, #tpu.memory_space<vmem>>, vector<1x512xf32>
    %21 = vector.broadcast %20 : vector<1x512xf32> to vector<32x512xf32>
    %22 = arith.addf %19, %21 : vector<32x512xf32>
    %c0_9 = arith.constant 0 : index
    %c0_10 = arith.constant 0 : index
    %23 = vector.load %arg4[%c0_9, %c0_10] : memref<512x512xf32, #tpu.memory_space<vmem>>, vector<512x512xf32>
    %cst_11 = arith.constant dense<0.000000e+00> : vector<32x512xf32>
    %24 = tpu.matmul %22, %23, %cst_11 {dimension_numbers = #tpu.dot_dimension_numbers<[1], [0], [0], [1], [0, 0, 1, 1], [], []>} : vector<32x512xf32>, vector<512x512xf32>, vector<32x512xf32> -> vector<32x512xf32>
    %c0_12 = arith.constant 0 : index
    %c0_13 = arith.constant 0 : index
    %25 = vector.load %arg5[%c0_12, %c0_13] : memref<1x512xf32, #tpu.memory_space<vmem>>, vector<1x512xf32>
    %26 = vector.broadcast %25 : vector<1x512xf32> to vector<32x512xf32>
    %27 = arith.addf %24, %26 : vector<32x512xf32>
    %cst_14 = arith.constant 5.000000e-01 : f32
    %28 = vector.broadcast %cst_14 : f32 to vector<32x512xf32>
    %29 = arith.mulf %28, %27 : vector<32x512xf32>
    %cst_15 = arith.constant 0.707106769 : f32
    %30 = vector.broadcast %cst_15 : f32 to vector<32x512xf32>
    %31 = arith.mulf %27, %30 : vector<32x512xf32>
    %cst_16 = arith.constant 0.000000e+00 : f32
    %32 = vector.broadcast %cst_16 : f32 to vector<32x512xf32>
    %33 = arith.subf %32, %31 : vector<32x512xf32>
    %34 = arith.maximumf %31, %33 : vector<32x512xf32>
    %cst_17 = arith.constant 0.327591091 : f32
    %35 = vector.broadcast %cst_17 : f32 to vector<32x512xf32>
    %36 = arith.mulf %35, %34 : vector<32x512xf32>
    %cst_18 = arith.constant 1.000000e+00 : f32
    %37 = vector.broadcast %cst_18 : f32 to vector<32x512xf32>
    %38 = arith.addf %37, %36 : vector<32x512xf32>
    %cst_19 = arith.constant 1.000000e+00 : f32
    %39 = vector.broadcast %cst_19 : f32 to vector<32x512xf32>
    %40 = arith.divf %39, %38 : vector<32x512xf32>
    %cst_20 = arith.constant 1.06140542 : f32
    %41 = vector.broadcast %cst_20 : f32 to vector<32x512xf32>
    %42 = arith.mulf %41, %40 : vector<32x512xf32>
    %cst_21 = arith.constant 1.45315206 : f32
    %43 = vector.broadcast %cst_21 : f32 to vector<32x512xf32>
    %44 = arith.subf %42, %43 : vector<32x512xf32>
    %45 = arith.mulf %44, %40 : vector<32x512xf32>
    %cst_22 = arith.constant 1.42141378 : f32
    %46 = vector.broadcast %cst_22 : f32 to vector<32x512xf32>
    %47 = arith.addf %45, %46 : vector<32x512xf32>
    %48 = arith.mulf %47, %40 : vector<32x512xf32>
    %cst_23 = arith.constant 0.284496725 : f32
    %49 = vector.broadcast %cst_23 : f32 to vector<32x512xf32>
    %50 = arith.subf %48, %49 : vector<32x512xf32>
    %51 = arith.mulf %50, %40 : vector<32x512xf32>
    %cst_24 = arith.constant 0.254829586 : f32
    %52 = vector.broadcast %cst_24 : f32 to vector<32x512xf32>
    %53 = arith.addf %51, %52 : vector<32x512xf32>
    %54 = arith.mulf %53, %40 : vector<32x512xf32>
    %cst_25 = arith.constant 0.000000e+00 : f32
    %55 = vector.broadcast %cst_25 : f32 to vector<32x512xf32>
    %56 = arith.subf %55, %34 : vector<32x512xf32>
    %57 = arith.mulf %56, %34 : vector<32x512xf32>
    %58 = math.exp %57 : vector<32x512xf32>
    %59 = arith.mulf %54, %58 : vector<32x512xf32>
    %cst_26 = arith.constant 1.000000e+00 : f32
    %60 = vector.broadcast %cst_26 : f32 to vector<32x512xf32>
    %61 = arith.subf %60, %59 : vector<32x512xf32>
    %cst_27 = arith.constant 0.000000e+00 : f32
    %62 = vector.broadcast %cst_27 : f32 to vector<32x512xf32>
    %63 = arith.cmpf oge, %31, %62 : vector<32x512xf32>
    %cst_28 = arith.constant 0.000000e+00 : f32
    %64 = vector.broadcast %cst_28 : f32 to vector<32x512xf32>
    %65 = arith.subf %64, %61 : vector<32x512xf32>
    %66 = arith.select %63, %61, %65 : vector<32x512xi1>, vector<32x512xf32>
    %cst_29 = arith.constant 1.000000e+00 : f32
    %67 = vector.broadcast %cst_29 : f32 to vector<32x512xf32>
    %68 = arith.addf %67, %66 : vector<32x512xf32>
    %69 = arith.mulf %29, %68 : vector<32x512xf32>
    %c0_30 = arith.constant 0 : index
    %c0_31 = arith.constant 0 : index
    %70 = vector.load %arg6[%c0_30, %c0_31] : memref<512x128xf32, #tpu.memory_space<vmem>>, vector<512x128xf32>
    %cst_32 = arith.constant dense<0.000000e+00> : vector<32x128xf32>
    %71 = tpu.matmul %69, %70, %cst_32 {dimension_numbers = #tpu.dot_dimension_numbers<[1], [0], [0], [1], [0, 0, 1, 1], [], []>} : vector<32x512xf32>, vector<512x128xf32>, vector<32x128xf32> -> vector<32x128xf32>
    %c0_33 = arith.constant 0 : index
    %c0_34 = arith.constant 0 : index
    %72 = vector.load %arg7[%c0_33, %c0_34] : memref<1x128xf32, #tpu.memory_space<vmem>>, vector<1x128xf32>
    %73 = vector.broadcast %72 : vector<1x128xf32> to vector<32x128xf32>
    %74 = arith.addf %71, %73 : vector<32x128xf32>
    %c0_35 = arith.constant 0 : index
    %c0_36 = arith.constant 0 : index
    %75 = vector.load %arg8[%c0_35, %c0_36] : memref<32x128xf32, #tpu.memory_space<vmem>>, vector<32x128xf32>
    tpu.vector_store %arg8[%c0_35, %c0_36], %74 {strides = array<i32>} : memref<32x128xf32, #tpu.memory_space<vmem>>, vector<32x128xf32>,
    return
  }
  func.func @transform_0(%arg0: i32) -> (i32, i32) {
    %c0_i32 = arith.constant 0 : i32
    %c0_i32_0 = arith.constant 0 : i32
    return %arg0, %c0_i32 : i32, i32
  }
  func.func @transform_1(%arg0: i32) -> (i32, i32) {
    %c0_i32 = arith.constant 0 : i32
    %c0_i32_0 = arith.constant 0 : i32
    %c0_i32_1 = arith.constant 0 : i32
    return %c0_i32, %c0_i32_0 : i32, i32
  }
  func.func @transform_2(%arg0: i32) -> (i32, i32) {
    %c0_i32 = arith.constant 0 : i32
    %c0_i32_0 = arith.constant 0 : i32
    %c0_i32_1 = arith.constant 0 : i32
    return %c0_i32, %c0_i32_0 : i32, i32
  }
  func.func @transform_3(%arg0: i32) -> (i32, i32) {
    %c0_i32 = arith.constant 0 : i32
    %c0_i32_0 = arith.constant 0 : i32
    %c0_i32_1 = arith.constant 0 : i32
    return %c0_i32, %c0_i32_0 : i32, i32
  }
  func.func @transform_4(%arg0: i32) -> (i32, i32) {
    %c0_i32 = arith.constant 0 : i32
    %c0_i32_0 = arith.constant 0 : i32
    %c0_i32_1 = arith.constant 0 : i32
    return %c0_i32, %c0_i32_0 : i32, i32
  }
  func.func @transform_5(%arg0: i32) -> (i32, i32) {
    %c0_i32 = arith.constant 0 : i32
    %c0_i32_0 = arith.constant 0 : i32
    %c0_i32_1 = arith.constant 0 : i32
    return %c0_i32, %c0_i32_0 : i32, i32
  }
  func.func @transform_6(%arg0: i32) -> (i32, i32) {
    %c0_i32 = arith.constant 0 : i32
    %c0_i32_0 = arith.constant 0 : i32
    %c0_i32_1 = arith.constant 0 : i32
    return %c0_i32, %c0_i32_0 : i32, i32
  }
  func.func @transform_7(%arg0: i32) -> (i32, i32) {
    %c0_i32 = arith.constant 0 : i32
    %c0_i32_0 = arith.constant 0 : i32
    return %arg0, %c0_i32 : i32, i32
  }
}

</mosaic_0001>

<bundles_post_ra>
// kernel: mapping_net_forward.1
= control target key start
LH: loop header
LB: loop body
LE: loop exit
PB: predicated region body
PF: predicated region fallthrough
CT: control target
= control target key end

     0   :  { %12 = vsyncpa [#allocation3], 0  ;;  %s2141_s24 = smov [#allocation2]   ;;  %s3114_s0 = inlined_call_operand.vmem [shape: f32[32,512], index: 0, kind: input, shape index: {}]   ;;  %s3115_s1 = inlined_call_operand.vmem [shape: f32[1,512], index: 1, kind: input, shape index: {}]   ;;  %s3116_s2 = inlined_call_operand.vmem [shape: f32[1,512], index: 2, kind: input, shape index: {}]   ;;  %s3117_s3 = inlined_call_operand.hbm [shape: f32[512,512], index: 3, kind: input, shape index: {}]   ;;  %s3118_s4 = inlined_call_operand.vmem [shape: f32[1,512], index: 4, kind: input, shape index: {}]   ;;  %s3119_s5 = inlined_call_operand.vmem [shape: f32[512,128], index: 5, kind: input, shape index: {}]   ;;  %s3120_s6 = inlined_call_operand.vmem [shape: f32[1,128], index: 6, kind: input, shape index: {}]   ;;  %s3121_s7 = inlined_call_operand.vmem [shape: f32[32,128], index: 7, kind: output, shape index: {}]  }
   0x1   :  { %s24_s25 = sshll.u32 %s2141_s24, 4  ;;  %s2117_s28 = scalar_lea.hbm %s3117_s3, 32768  ;;  %s25_s25 = int_to_ptr.vmem [resolvable:$true] %s24_s25 }
   0x2   :  { %p2118_p0 = scmp.ne.s32.totalorder %s3117_s3, %s2117_s28  ;;  %p2121_p1 = scmp.lt.u32.totalorder %s2117_s28, %s3117_s3 }
   0x4   :  { %p2123_p2 = pnand %p2121_p1, %p2118_p0 }
   0x6   :  { %2126 = shalt.err (!%p2123_p2)
}
   0x7   :  { %s2127_s10 = scalar_lea.vmem %s25_s25, 32768  ;;  %p2132_p4 = scmp.lt.s32.totalorder %s25_s25, %s25_s25 }
   0x8   :  { %p2128_p3 = scmp.ne.s32.totalorder %s25_s25, %s2127_s10  ;;  %p2133_p5 = scmp.lt.s32.totalorder %s2127_s10, %s2127_s10 }
   0xa   :  { %p2134_p6 = por %p2133_p5, %p2132_p4 }
   0xc   :  { %p2135_p7 = pnand %p2134_p6, %p2128_p3 }
   0xe   :  { %2138 = shalt.err (!%p2135_p7)
}
   0xf   :  { %s2142_s11 = smov 512   ;;  %s2143_s12 = smov 32  }
  0x10   :  { %30 = dma.hbm_to_vmem [thread:$0]  %s3117_s3, 32768, %s25_s25, [#allocation3], %s2142_s11, %s2142_s11, %s2143_s12  }
  0x11   :  { %2139 = dma.done.wait [#allocation3], 32768  }
  0x12   :  { %2140 = vsyncadd [#allocation3], 4294934528  ;;  %v2199_v0 = vld [vmem:[%s3114_s0] sm:$0xff]  ;;  %v2204_v1 = vld [vmem:[%s3114_s0 + $0x8] sm:$0xff] }
  0x13   :  { %v2209_v2 = vld [vmem:[%s3114_s0 + $0x10] sm:$0xff]  ;;  %v56_v3 = vadd.f32 %v2204_v1, %v2199_v0  ;;  %v2216_v4 = vld [vmem:[%s3114_s0 + $0x40] sm:$0xff]  ;;  %v2221_v5 = vld [vmem:[%s3114_s0 + $0x48] sm:$0xff] }
  0x14   :  { %v2226_v6 = vld [vmem:[%s3114_s0 + $0x18] sm:$0xff]  ;;  %v2231_v7 = vld [vmem:[%s3114_s0 + $0x50] sm:$0xff]  ;;  %v66_v8 = vadd.f32 %v2221_v5, %v2216_v4  ;;  %v2238_v9 = vld [vmem:[%s3114_s0 + $0x20] sm:$0xff] }
  0x15   :  { %v57_v10 = vadd.f32 %v56_v3, %v2209_v2  ;;  %v2244_v11 = vld [vmem:[%s3114_s0 + $0x58] sm:$0xff]  ;;  %v2249_v12 = vld [vmem:[%s3114_s0 + $0x28] sm:$0xff]  ;;  %v2254_v13 = vld [vmem:[%s3114_s0 + $0x30] sm:$0xff] }
  0x16   :  { %v67_v14 = vadd.f32 %v66_v8, %v2231_v7  ;;  %v61_v15 = vadd.f32 %v2249_v12, %v2238_v9  ;;  %v2262_v16 = vld [vmem:[%s3114_s0 + $0x60] sm:$0xff]  ;;  %v2267_v17 = vld [vmem:[%s3114_s0 + $0x68] sm:$0xff]  ;;  %v2272_v18 = vld [vmem:[%s3114_s0 + $0x70] sm:$0xff] }
  0x17   :  { %v58_v19 = vadd.f32 %v57_v10, %v2226_v6  ;;  %v2278_v20 = vld [vmem:[%s3114_s0 + $0x38] sm:$0xff]  ;;  %v71_v21 = vadd.f32 %v2267_v17, %v2262_v16  ;;  %v238_v28 = vld [vmem:[#allocation2 + $0x8] sm:$0xff]  ;;  %v237_v33 = vld [vmem:[#allocation2] sm:$0xff] }
  0x18   :  { %v68_v22 = vadd.f32 %v67_v14, %v2244_v11  ;;  %v62_v23 = vadd.f32 %v61_v15, %v2254_v13  ;;  %v2287_v24 = vld [vmem:[%s3114_s0 + $0x78] sm:$0xff]  ;;  %v242_v29 = vld [vmem:[#allocation2 + $0x28] sm:$0xff]  ;;  %v241_v34 = vld [vmem:[#allocation2 + $0x20] sm:$0xff] }
  0x19   :  { %59 = vadd.xlane.f32.xlu0 %v58_v19  ;;  %v72_v25 = vadd.f32 %v71_v21, %v2272_v18  ;;  %v240_v30 = vld [vmem:[#allocation2 + $0x18] sm:$0xff]  ;;  %v1690_v31 = vpack.c.bf16 %v242_v29, %v238_v28  ;;  %v1692_v36 = vpack.c.bf16 %v241_v34, %v237_v33  ;;  %v239_v37 = vld [vmem:[#allocation2 + $0x10] sm:$0xff]  ;;  %v246_v39 = vld [vmem:[#allocation2 + $0x48] sm:$0xff] }
  0x1a   :  { %69 = vadd.xlane.f32.xlu1 %v68_v22  ;;  %v63_v26 = vadd.f32 %v62_v23, %v2278_v20  ;;  %v244_v32 = vld [vmem:[#allocation2 + $0x38] sm:$0xff]  ;;  %v243_v38 = vld [vmem:[#allocation2 + $0x30] sm:$0xff]  ;;  %v250_v41 = vld [vmem:[#allocation2 + $0x68] sm:$0xff] }
  0x1b   :  { %v73_v27 = vadd.f32 %v72_v25, %v2287_v24  ;;  %v1818_v35 = vpack.c.bf16 %v244_v32, %v240_v30  ;;  %1691 = vmatprep.subr.bf16.mxu0 %v1690_v31  ;;  %v1820_v40 = vpack.c.bf16 %v243_v38, %v239_v37  ;;  %v248_v42 = vld [vmem:[#allocation2 + $0x58] sm:$0xff]  ;;  %v1694_v44 = vpack.c.bf16 %v250_v41, %v246_v39  ;;  %v245_v46 = vld [vmem:[#allocation2 + $0x40] sm:$0xff]  ;;  %v247_v48 = vld [vmem:[#allocation2 + $0x50] sm:$0xff] }
  0x1c   :  { %v252_v43 = vld [vmem:[#allocation2 + $0x78] sm:$0xff]  ;;  %1693 = vmatpush1.bf16.msra.mxu0 %v1692_v36  ;;  %v249_v47 = vld [vmem:[#allocation2 + $0x60] sm:$0xff]  ;;  %v251_v50 = vld [vmem:[#allocation2 + $0x70] sm:$0xff] }
  0x1d   :  { %64 = vadd.xlane.f32.xlu0 %v63_v26  ;;  %1819 = vmatprep.subr.bf16.mxu1 %v1818_v35  ;;  %v1822_v45 = vpack.c.bf16 %v252_v43, %v248_v42  ;;  %v1696_v49 = vpack.c.bf16 %v249_v47, %v245_v46  ;;  %v254_v51 = vld [vmem:[#allocation2 + $0x88] sm:$0xff]  ;;  %v1824_v53 = vpack.c.bf16 %v251_v50, %v247_v48  ;;  %v256_v55 = vld [vmem:[#allocation2 + $0x98] sm:$0xff]  ;;  %v253_v57 = vld [vmem:[#allocation2 + $0x80] sm:$0xff] }
  0x1e   :  { %74 = vadd.xlane.f32.xlu1 %v73_v27  ;;  %1821 = vmatpush1.bf16.msra.mxu1 %v1820_v40  ;;  %v258_v52 = vld [vmem:[#allocation2 + $0xa8] sm:$0xff]  ;;  %v260_v56 = vld [vmem:[#allocation2 + $0xb8] sm:$0xff]  ;;  %v257_v59 = vld [vmem:[#allocation2 + $0xa0] sm:$0xff] }
  0x1f   :  { %1695 = vmatprep.subr.bf16.mxu0 %v1694_v44  ;;  %1823 = vmatprep.subr.bf16.mxu1 %v1822_v45  ;;  %v1698_v54 = vpack.c.bf16 %v258_v52, %v254_v51  ;;  %v1826_v58 = vpack.c.bf16 %v260_v56, %v256_v55  ;;  %v255_v60 = vld [vmem:[#allocation2 + $0x90] sm:$0xff]  ;;  %v1700_v62 = vpack.c.bf16 %v257_v59, %v253_v57  ;;  %v262_v63 = vld [vmem:[#allocation2 + $0xc8] sm:$0xff]  ;;  %v264_v8 = vld [vmem:[#allocation2 + $0xd8] sm:$0xff] }
  0x20   :  { %v259_v61 = vld [vmem:[#allocation2 + $0xb0] sm:$0xff]  ;;  %1697 = vmatpush1.bf16.msra.mxu0 %v1696_v49  ;;  %v266_v3 = vld [vmem:[#allocation2 + $0xe8] sm:$0xff]  ;;  %v268_v15 = vld [vmem:[#allocation2 + $0xf8] sm:$0xff] }
  0x21   :  { %1699 = vmatprep.subr.bf16.mxu0 %v1698_v54  ;;  %v1828_v10 = vpack.c.bf16 %v259_v61, %v255_v60  ;;  %v1702_v14 = vpack.c.bf16 %v266_v3, %v262_v63  ;;  %v261_v19 = vld [vmem:[#allocation2 + $0xc0] sm:$0xff]  ;;  %v1830_v22 = vpack.c.bf16 %v268_v15, %v264_v8  ;;  %v263_v23 = vld [vmem:[#allocation2 + $0xd0] sm:$0xff]  ;;  %v270_v26 = vld [vmem:[#allocation2 + $0x108] sm:$0xff] }
  0x22   :  { %1825 = vmatpush1.bf16.msra.mxu1 %v1824_v53  ;;  %v265_v21 = vld [vmem:[#allocation2 + $0xe0] sm:$0xff]  ;;  %v267_v25 = vld [vmem:[#allocation2 + $0xf0] sm:$0xff]  ;;  %v274_v27 = vld [vmem:[#allocation2 + $0x128] sm:$0xff] }
  0x23   :  { %1827 = vmatprep.subr.bf16.mxu1 %v1826_v58  ;;  %v272_v28 = vld [vmem:[#allocation2 + $0x118] sm:$0xff]  ;;  %v1704_v30 = vpack.c.bf16 %v265_v21, %v261_v19  ;;  %v1832_v31 = vpack.c.bf16 %v267_v25, %v263_v23  ;;  %v1706_v32 = vpack.c.bf16 %v274_v27, %v270_v26  ;;  %v269_v33 = vld [vmem:[#allocation2 + $0x100] sm:$0xff]  ;;  %v271_v35 = vld [vmem:[#allocation2 + $0x110] sm:$0xff] }
  0x24   :  { %v276_v29 = vld [vmem:[#allocation2 + $0x138] sm:$0xff]  ;;  %1701 = vmatpush1.bf16.msra.mxu0 %v1700_v62  ;;  %v273_v34 = vld [vmem:[#allocation2 + $0x120] sm:$0xff]  ;;  %v275_v37 = vld [vmem:[#allocation2 + $0x130] sm:$0xff] }
  0x25   :  { %1703 = vmatprep.subr.bf16.mxu0 %v1702_v14  ;;  %v1834_v36 = vpack.c.bf16 %v276_v29, %v272_v28  ;;  %v278_v38 = vld [vmem:[#allocation2 + $0x148] sm:$0xff]  ;;  %v280_v40 = vld [vmem:[#allocation2 + $0x158] sm:$0xff]  ;;  %v1708_v42 = vpack.c.bf16 %v273_v34, %v269_v33  ;;  %v1836_v43 = vpack.c.bf16 %v275_v37, %v271_v35  ;;  %v277_v45 = vld [vmem:[#allocation2 + $0x140] sm:$0xff] }
  0x26   :  { %1829 = vmatpush1.bf16.msra.mxu1 %v1828_v10  ;;  %v282_v39 = vld [vmem:[#allocation2 + $0x168] sm:$0xff]  ;;  %v284_v41 = vld [vmem:[#allocation2 + $0x178] sm:$0xff]  ;;  %v281_v46 = vld [vmem:[#allocation2 + $0x160] sm:$0xff] }
  0x27   :  { %1831 = vmatprep.subr.bf16.mxu1 %v1830_v22  ;;  %v1710_v44 = vpack.c.bf16 %v282_v39, %v278_v38  ;;  %v279_v47 = vld [vmem:[#allocation2 + $0x150] sm:$0xff]  ;;  %v1838_v48 = vpack.c.bf16 %v284_v41, %v280_v40  ;;  %v286_v50 = vld [vmem:[#allocation2 + $0x188] sm:$0xff]  ;;  %v288_v52 = vld [vmem:[#allocation2 + $0x198] sm:$0xff]  ;;  %v1712_v54 = vpack.c.bf16 %v281_v46, %v277_v45 }
  0x28   :  { %1705 = vmatpush1.bf16.msra.mxu0 %v1704_v30  ;;  %v283_v49 = vld [vmem:[#allocation2 + $0x170] sm:$0xff]  ;;  %v290_v51 = vld [vmem:[#allocation2 + $0x1a8] sm:$0xff]  ;;  %v292_v53 = vld [vmem:[#allocation2 + $0x1b8] sm:$0xff] }
  0x29   :  { %1707 = vmatprep.subr.bf16.mxu0 %v1706_v32  ;;  %v1840_v55 = vpack.c.bf16 %v283_v49, %v279_v47  ;;  %v1714_v56 = vpack.c.bf16 %v290_v51, %v286_v50  ;;  %v285_v57 = vld [vmem:[#allocation2 + $0x180] sm:$0xff]  ;;  %v287_v59 = vld [vmem:[#allocation2 + $0x190] sm:$0xff]  ;;  %v1842_v60 = vpack.c.bf16 %v292_v53, %v288_v52  ;;  %v294_v62 = vld [vmem:[#allocation2 + $0x1c8] sm:$0xff] }
  0x2a   :  { %1833 = vmatpush1.bf16.msra.mxu1 %v1832_v31  ;;  %v289_v58 = vld [vmem:[#allocation2 + $0x1a0] sm:$0xff]  ;;  %v291_v61 = vld [vmem:[#allocation2 + $0x1b0] sm:$0xff]  ;;  %v298_v63 = vld [vmem:[#allocation2 + $0x1e8] sm:$0xff] }
  0x2b   :  { %1835 = vmatprep.subr.bf16.mxu1 %v1834_v36  ;;  %v296_v3 = vld [vmem:[#allocation2 + $0x1d8] sm:$0xff]  ;;  %v1716_v10 = vpack.c.bf16 %v289_v58, %v285_v57  ;;  %v1844_v14 = vpack.c.bf16 %v291_v61, %v287_v59  ;;  %v1718_v15 = vpack.c.bf16 %v298_v63, %v294_v62  ;;  %v293_v19 = vld [vmem:[#allocation2 + $0x1c0] sm:$0xff]  ;;  %v295_v22 = vld [vmem:[#allocation2 + $0x1d0] sm:$0xff] }
  0x2c   :  { %1709 = vmatpush1.bf16.msra.mxu0 %v1708_v42  ;;  %v300_v8 = vld [vmem:[#allocation2 + $0x1f8] sm:$0xff]  ;;  %v297_v21 = vld [vmem:[#allocation2 + $0x1e0] sm:$0xff]  ;;  %v299_v25 = vld [vmem:[#allocation2 + $0x1f0] sm:$0xff] }
  0x2d   :  { %1711 = vmatprep.subr.bf16.mxu0 %v1710_v44  ;;  %v1846_v23 = vpack.c.bf16 %v300_v8, %v296_v3  ;;  %v302_v26 = vld [vmem:[#allocation2 + $0x208] sm:$0xff]  ;;  %v304_v28 = vld [vmem:[#allocation2 + $0x218] sm:$0xff]  ;;  %v1720_v30 = vpack.c.bf16 %v297_v21, %v293_v19  ;;  %v1848_v31 = vpack.c.bf16 %v299_v25, %v295_v22  ;;  %v301_v33 = vld [vmem:[#allocation2 + $0x200] sm:$0xff] }
  0x2e   :  { %1837 = vmatpush1.bf16.msra.mxu1 %v1836_v43  ;;  %v306_v27 = vld [vmem:[#allocation2 + $0x228] sm:$0xff]  ;;  %v308_v29 = vld [vmem:[#allocation2 + $0x238] sm:$0xff]  ;;  %v305_v34 = vld [vmem:[#allocation2 + $0x220] sm:$0xff] }
  0x2f   :  { %1839 = vmatprep.subr.bf16.mxu1 %v1838_v48  ;;  %v1722_v32 = vpack.c.bf16 %v306_v27, %v302_v26  ;;  %v303_v35 = vld [vmem:[#allocation2 + $0x210] sm:$0xff]  ;;  %v1850_v36 = vpack.c.bf16 %v308_v29, %v304_v28  ;;  %v310_v38 = vld [vmem:[#allocation2 + $0x248] sm:$0xff]  ;;  %v312_v40 = vld [vmem:[#allocation2 + $0x258] sm:$0xff]  ;;  %v1724_v42 = vpack.c.bf16 %v305_v34, %v301_v33 }
  0x30   :  { %1713 = vmatpush1.bf16.msra.mxu0 %v1712_v54  ;;  %v307_v37 = vld [vmem:[#allocation2 + $0x230] sm:$0xff]  ;;  %v314_v39 = vld [vmem:[#allocation2 + $0x268] sm:$0xff]  ;;  %v316_v41 = vld [vmem:[#allocation2 + $0x278] sm:$0xff] }
  0x31   :  { %1715 = vmatprep.subr.bf16.mxu0 %v1714_v56  ;;  %v1852_v43 = vpack.c.bf16 %v307_v37, %v303_v35  ;;  %v1726_v44 = vpack.c.bf16 %v314_v39, %v310_v38  ;;  %v309_v45 = vld [vmem:[#allocation2 + $0x240] sm:$0xff]  ;;  %v311_v47 = vld [vmem:[#allocation2 + $0x250] sm:$0xff]  ;;  %v1854_v48 = vpack.c.bf16 %v316_v41, %v312_v40  ;;  %v318_v50 = vld [vmem:[#allocation2 + $0x288] sm:$0xff] }
  0x32   :  { %1841 = vmatpush1.bf16.msra.mxu1 %v1840_v55  ;;  %v313_v46 = vld [vmem:[#allocation2 + $0x260] sm:$0xff]  ;;  %v315_v49 = vld [vmem:[#allocation2 + $0x270] sm:$0xff]  ;;  %v322_v51 = vld [vmem:[#allocation2 + $0x2a8] sm:$0xff] }
  0x33   :  { %1843 = vmatprep.subr.bf16.mxu1 %v1842_v60  ;;  %v320_v52 = vld [vmem:[#allocation2 + $0x298] sm:$0xff]  ;;  %v1728_v54 = vpack.c.bf16 %v313_v46, %v309_v45  ;;  %v1856_v55 = vpack.c.bf16 %v315_v49, %v311_v47  ;;  %v1730_v56 = vpack.c.bf16 %v322_v51, %v318_v50  ;;  %v317_v57 = vld [vmem:[#allocation2 + $0x280] sm:$0xff]  ;;  %v319_v60 = vld [vmem:[#allocation2 + $0x290] sm:$0xff] }
  0x34   :  { %1717 = vmatpush1.bf16.msra.mxu0 %v1716_v10  ;;  %v324_v53 = vld [vmem:[#allocation2 + $0x2b8] sm:$0xff]  ;;  %v321_v58 = vld [vmem:[#allocation2 + $0x2a0] sm:$0xff]  ;;  %v323_v61 = vld [vmem:[#allocation2 + $0x2b0] sm:$0xff] }
  0x35   :  { %1719 = vmatprep.subr.bf16.mxu0 %v1718_v15  ;;  %v1858_v59 = vpack.c.bf16 %v324_v53, %v320_v52  ;;  %v1732_v62 = vpack.c.bf16 %v321_v58, %v317_v57  ;;  %v1860_v63 = vpack.c.bf16 %v323_v61, %v319_v60  ;;  %v326_v52 = vld [vmem:[#allocation2 + $0x2c8] sm:$0xff]  ;;  %v325_v57 = vld [vmem:[#allocation2 + $0x2c0] sm:$0xff]  ;;  %v327_v61 = vld [vmem:[#allocation2 + $0x2d0] sm:$0xff] }
  0x36   :  { %1845 = vmatpush1.bf16.msra.mxu1 %v1844_v14  ;;  %v330_v53 = vld [vmem:[#allocation2 + $0x2e8] sm:$0xff]  ;;  %v329_v58 = vld [vmem:[#allocation2 + $0x2e0] sm:$0xff] }
  0x37   :  { %1847 = vmatprep.subr.bf16.mxu1 %v1846_v23  ;;  %v1736_v60 = vpack.c.bf16 %v329_v58, %v325_v57  ;;  %v357_v58 = vld [vmem:[#allocation2 + $0x3c0] sm:$0xff] }
  0x38   :  { %1721 = vmatpush1.bf16.msra.mxu0 %v1720_v30 }
  0x39   :  { %1723 = vmatprep.subr.bf16.mxu0 %v1722_v32 }
  0x3a   :  { %1849 = vmatpush1.bf16.msra.mxu1 %v1848_v31 }
  0x3b   :  { %1851 = vmatprep.subr.bf16.mxu1 %v1850_v36 }
  0x3c   :  { %1725 = vmatpush1.bf16.msra.mxu0 %v1724_v42 }
  0x3d   :  { %1727 = vmatprep.subr.bf16.mxu0 %v1726_v44 }
  0x3e   :  { %1853 = vmatpush1.bf16.msra.mxu1 %v1852_v43 }
  0x3f   :  { %1855 = vmatprep.subr.bf16.mxu1 %v1854_v48 }
  0x40   :  { %1729 = vmatpush1.bf16.msra.mxu0 %v1728_v54  ;;  %v328_v54 = vld [vmem:[#allocation2 + $0x2d8] sm:$0xff] }
  0x41   :  { %1731 = vmatprep.subr.bf16.mxu0 %v1730_v56  ;;  %v332_v56 = vld [vmem:[#allocation2 + $0x2f8] sm:$0xff] }
  0x42   :  { %1857 = vmatpush1.bf16.msra.mxu1 %v1856_v55  ;;  %v1734_v55 = vpack.c.bf16 %v330_v53, %v326_v52  ;;  %v362_v53 = vld [vmem:[#allocation2 + $0x3e8] sm:$0xff] }
  0x43   :  { %1859 = vmatprep.subr.bf16.mxu1 %v1858_v59  ;;  %v1862_v59 = vpack.c.bf16 %v332_v56, %v328_v54  ;;  %v360_v54 = vld [vmem:[#allocation2 + $0x3d8] sm:$0xff] }
  0x44   :  { %1733 = vmatpush1.bf16.msra.mxu0 %v1732_v62  ;;  %v331_v62 = vld [vmem:[#allocation2 + $0x2f0] sm:$0xff] }
  0x45   :  { %1735 = vmatprep.subr.bf16.mxu0 %v1734_v55  ;;  %v364_v55 = vld [vmem:[#allocation2 + $0x3f8] sm:$0xff] }
  0x46   :  { %1861 = vmatpush1.bf16.msra.mxu1 %v1860_v63  ;;  %v1864_v63 = vpack.c.bf16 %v331_v62, %v327_v61  ;;  %v1878_v57 = vpack.c.bf16 %v364_v55, %v360_v54  ;;  %v363_v62 = vld [vmem:[#allocation2 + $0x3f0] sm:$0xff]  ;;  %v374_v55 = vld [vmem:[#allocation2 + $0x448] sm:$0xff] }
  0x47   :  { %1863 = vmatprep.subr.bf16.mxu1 %v1862_v59  ;;  %v361_v59 = vld [vmem:[#allocation2 + $0x3e0] sm:$0xff] }
  0x48   :  { %1737 = vmatpush1.bf16.msra.mxu0 %v1736_v60  ;;  %v359_v60 = vld [vmem:[#allocation2 + $0x3d0] sm:$0xff]  ;;  %v1752_v61 = vpack.c.bf16 %v361_v59, %v357_v58  ;;  %v376_v58 = vld [vmem:[#allocation2 + $0x458] sm:$0xff] }
  0x4a   :  { %1865 = vmatpush1.bf16.msra.mxu1 %v1864_v63  ;;  %v1880_v63 = vpack.c.bf16 %v363_v62, %v359_v60 }
  0xa6   :  { %v60_v3 = vpop.xlane.xlu0 %59 }
  0xa7   :  { %v77_v8 = vmul.f32 0.001953125, %v60_v3  ;;  %v70_v10 = vpop.xlane.xlu1 %69  ;;  %v334_v3 = vld [vmem:[#allocation2 + $0x308] sm:$0xff] }
  0xa8   :  { %v79_v14 = vmul.f32 0.001953125, %v70_v10  ;;  %v336_v10 = vld [vmem:[#allocation2 + $0x318] sm:$0xff] }
  0xa9   :  { %v2293_v15 = vsub.f32 %v2199_v0, %v77_v8  ;;  %v2296_v19 = vsub.f32 %v2204_v1, %v77_v8  ;;  %v2299_v21 = vsub.f32 %v2209_v2, %v77_v8  ;;  %v2302_v22 = vsub.f32 %v2226_v6, %v77_v8  ;;  %v338_v8 = vld [vmem:[#allocation2 + $0x328] sm:$0xff] }
  0xaa   :  { %v2305_v23 = vsub.f32 %v2216_v4, %v79_v14  ;;  %v2308_v25 = vsub.f32 %v2221_v5, %v79_v14  ;;  %v65_v26 = vpop.xlane.xlu0 %64  ;;  %v2311_v27 = vsub.f32 %v2231_v7, %v79_v14  ;;  %v2314_v0 = vsub.f32 %v2244_v11, %v79_v14 }
  0xab   :  { %v78_v1 = vmul.f32 0.001953125, %v65_v26  ;;  %v75_v28 = vpop.xlane.xlu1 %74  ;;  %v97_v2 = vmul.f32 %v2293_v15, %v2293_v15  ;;  %v98_v6 = vmul.f32 %v2296_v19, %v2296_v19  ;;  %v99_v4 = vmul.f32 %v2299_v21, %v2299_v21  ;;  %v340_v26 = vld [vmem:[#allocation2 + $0x338] sm:$0xff] }
  0xac   :  { %v80_v5 = vmul.f32 0.001953125, %v75_v28  ;;  %v100_v29 = vmul.f32 %v2302_v22, %v2302_v22  ;;  %v105_v7 = vmul.f32 %v2305_v23, %v2305_v23  ;;  %v106_v11 = vmul.f32 %v2308_v25, %v2308_v25  ;;  %v337_v28 = vld [vmem:[#allocation2 + $0x320] sm:$0xff] }
  0xad   :  { %v2329_v30 = vsub.f32 %v2238_v9, %v78_v1  ;;  %v2332_v31 = vsub.f32 %v2249_v12, %v78_v1  ;;  %v113_v32 = vadd.f32 %v98_v6, %v97_v2  ;;  %v107_v33 = vmul.f32 %v2311_v27, %v2311_v27 }
  0xae   :  { %v2337_v34 = vsub.f32 %v2262_v16, %v80_v5  ;;  %v2340_v35 = vsub.f32 %v2267_v17, %v80_v5  ;;  %v108_v36 = vmul.f32 %v2314_v0, %v2314_v0  ;;  %v123_v37 = vadd.f32 %v106_v11, %v105_v7  ;;  %v342_v7 = vld [vmem:[#allocation2 + $0x348] sm:$0xff] }
  0xaf   :  { %v114_v38 = vadd.f32 %v113_v32, %v99_v4  ;;  %v2345_v9 = vsub.f32 %v2254_v13, %v78_v1  ;;  %v2348_v12 = vsub.f32 %v2278_v20, %v78_v1  ;;  %v101_v39 = vmul.f32 %v2329_v30, %v2329_v30  ;;  %v333_v1 = vld [vmem:[#allocation2 + $0x300] sm:$0xff]  ;;  %v335_v4 = vld [vmem:[#allocation2 + $0x310] sm:$0xff]  ;;  %v346_v11 = vld [vmem:[#allocation2 + $0x368] sm:$0xff] }
  0xb0   :  { %v124_v40 = vadd.f32 %v123_v37, %v107_v33  ;;  %v102_v16 = vmul.f32 %v2332_v31, %v2332_v31  ;;  %v2355_v17 = vsub.f32 %v2272_v18, %v80_v5  ;;  %v2358_v41 = vsub.f32 %v2287_v24, %v80_v5  ;;  %v339_v5 = vld [vmem:[#allocation2 + $0x330] sm:$0xff]  ;;  %v344_v32 = vld [vmem:[#allocation2 + $0x358] sm:$0xff]  ;;  %v341_v37 = vld [vmem:[#allocation2 + $0x340] sm:$0xff] }
  0xb1   :  { %v115_v42 = vadd.f32 %v114_v38, %v100_v29  ;;  %v103_v13 = vmul.f32 %v2345_v9, %v2345_v9  ;;  %v109_v20 = vmul.f32 %v2337_v34, %v2337_v34  ;;  %v104_v43 = vmul.f32 %v2348_v12, %v2348_v12  ;;  %v345_v38 = vld [vmem:[#allocation2 + $0x360] sm:$0xff] }
  0xb2   :  { %v118_v44 = vadd.f32 %v102_v16, %v101_v39  ;;  %v110_v45 = vmul.f32 %v2340_v35, %v2340_v35  ;;  %v111_v18 = vmul.f32 %v2355_v17, %v2355_v17  ;;  %v125_v24 = vadd.f32 %v124_v40, %v108_v36  ;;  %v348_v36 = vld [vmem:[#allocation2 + $0x378] sm:$0xff]  ;;  %v343_v16 = vld [vmem:[#allocation2 + $0x350] sm:$0xff] }
  0xb3   :  { %116 = vadd.xlane.f32.xlu0 %v115_v42  ;;  %v112_v47 = vmul.f32 %v2358_v41, %v2358_v41  ;;  %v1738_v14 = vpack.c.bf16 %v338_v8, %v334_v3  ;;  %v1866_v2 = vpack.c.bf16 %v340_v26, %v336_v10  ;;  %v1740_v6 = vpack.c.bf16 %v337_v28, %v333_v1  ;;  %v347_v42 = vld [vmem:[#allocation2 + $0x370] sm:$0xff]  ;;  %v366_v3 = vld [vmem:[#allocation2 + $0x408] sm:$0xff]  ;;  %v368_v10 = vld [vmem:[#allocation2 + $0x418] sm:$0xff] }
  0xb4   :  { %v119_v46 = vadd.f32 %v118_v44, %v103_v13  ;;  %v128_v48 = vadd.f32 %v110_v45, %v109_v20  ;;  %v1868_v29 = vpack.c.bf16 %v339_v5, %v335_v4  ;;  %v1742_v33 = vpack.c.bf16 %v346_v11, %v342_v7  ;;  %v350_v20 = vld [vmem:[#allocation2 + $0x388] sm:$0xff]  ;;  %v352_v44 = vld [vmem:[#allocation2 + $0x398] sm:$0xff] }
  0xb5   :  { %1739 = vmatprep.subr.bf16.mxu0 %v1738_v14  ;;  %1867 = vmatprep.subr.bf16.mxu1 %v1866_v2  ;;  %v1870_v39 = vpack.c.bf16 %v348_v36, %v344_v32  ;;  %v1744_v40 = vpack.c.bf16 %v345_v38, %v341_v37  ;;  %v1872_v13 = vpack.c.bf16 %v347_v42, %v343_v16  ;;  %v370_v8 = vld [vmem:[#allocation2 + $0x428] sm:$0xff]  ;;  %v372_v26 = vld [vmem:[#allocation2 + $0x438] sm:$0xff]  ;;  %v161_v42 = vld [vmem:[%s3115_s1] sm:$0xf] }
  0xb6   :  { %v120_v49 = vadd.f32 %v119_v46, %v104_v43  ;;  %v129_v50 = vadd.f32 %v128_v48, %v111_v18  ;;  %1741 = vmatpush1.bf16.msra.mxu0 %v1740_v6  ;;  %1869 = vmatpush1.bf16.msra.mxu1 %v1868_v29  ;;  %v354_v43 = vld [vmem:[#allocation2 + $0x3a8] sm:$0xff]  ;;  %v356_v18 = vld [vmem:[#allocation2 + $0x3b8] sm:$0xff]  ;;  %v353_v46 = vld [vmem:[#allocation2 + $0x3a0] sm:$0xff]  ;;  %v1754_v14 = vpack.c.bf16 %v370_v8, %v366_v3  ;;  %v163_v6 = vlaneseq }
  0xb7   :  { %126 = vadd.xlane.f32.xlu0 %v125_v24  ;;  %1743 = vmatprep.subr.bf16.mxu0 %v1742_v33  ;;  %v1746_v45 = vpack.c.bf16 %v354_v43, %v350_v20  ;;  %v349_v24 = vld [vmem:[#allocation2 + $0x380] sm:$0xff]  ;;  %v1882_v1 = vpack.c.bf16 %v372_v26, %v368_v10 }
  0xb8   :  { %121 = vadd.xlane.f32.xlu1 %v120_v49  ;;  %v130_v51 = vadd.f32 %v129_v50, %v112_v47  ;;  %1871 = vmatprep.subr.bf16.mxu1 %v1870_v39  ;;  %v1874_v47 = vpack.c.bf16 %v356_v18, %v352_v44  ;;  %v1748_v48 = vpack.c.bf16 %v353_v46, %v349_v24  ;;  %v351_v49 = vld [vmem:[#allocation2 + $0x390] sm:$0xff]  ;;  %v164_v11 = vshrl.u32 %v163_v6, 7  ;;  %v199_v20 = vld [vmem:[%s3116_s2] sm:$0xf] }
  0xb9   :  { %v355_v50 = vld [vmem:[#allocation2 + $0x3b0] sm:$0xff]  ;;  %v365_v46 = vld [vmem:[#allocation2 + $0x400] sm:$0xff] }
  0xba   :  { %1745 = vmatpush1.bf16.msra.mxu0 %v1744_v40  ;;  %1873 = vmatpush1.bf16.msra.mxu1 %v1872_v13  ;;  %v1876_v52 = vpack.c.bf16 %v355_v50, %v351_v49  ;;  %v2372_v38 = vsub.s32 1, %v164_v11  ;;  %v2374_v40 = vsub.s32 2, %v164_v11  ;;  %v2376_v16 = vsub.s32 0, %v164_v11  ;;  %v369_v50 = vld [vmem:[#allocation2 + $0x420] sm:$0xff] }
  0xbb   :  { %1747 = vmatprep.subr.bf16.mxu0 %v1746_v45  ;;  %1875 = vmatprep.subr.bf16.mxu1 %v1874_v47  ;;  %v2412_v59 = vsub.s32 3, %v164_v11  ;;  %v1756_v62 = vpack.c.bf16 %v369_v50, %v365_v46  ;;  %v377_v6 = vld [vmem:[#allocation2 + $0x460] sm:$0xff] }
  0xbc   :  { %131 = vadd.xlane.f32.xlu1 %v130_v51  ;;  %v358_v51 = vld [vmem:[#allocation2 + $0x3c8] sm:$0xff]  ;;  %v2385_v43 = vrot.slane %v161_v42, %v2372_v38  ;;  %v2388_v44 = vrot.slane %v161_v42, %v2374_v40  ;;  %v2391_v45 = vrot.slane %v161_v42, %v2376_v16  ;;  %v2396_v24 = vrot.slane %v199_v20, %v2372_v38 }
  0xbd   :  { %v1750_v56 = vpack.c.bf16 %v362_v53, %v358_v51  ;;  %v2403_v49 = vrot.slane %v199_v20, %v2376_v16  ;;  %v367_v51 = vld [vmem:[#allocation2 + $0x410] sm:$0xff]  ;;  %v2408_v54 = vrot.slane %v199_v20, %v2374_v40 }
  0xbe   :  { %1749 = vmatpush1.bf16.msra.mxu0 %v1748_v48  ;;  %1877 = vmatpush1.bf16.msra.mxu1 %v1876_v52  ;;  %v371_v52 = vld [vmem:[#allocation2 + $0x430] sm:$0xff] }
  0xbf   :  { %1751 = vmatprep.subr.bf16.mxu0 %v1750_v56  ;;  %1879 = vmatprep.subr.bf16.mxu1 %v1878_v57  ;;  %v378_v56 = vld [vmem:[#allocation2 + $0x468] sm:$0xff] }
  0xc0   :  { %v1758_v10 = vpack.c.bf16 %v378_v56, %v374_v55  ;;  %v387_v55 = vld [vmem:[#allocation2 + $0x4b0] sm:$0xff] }
  0xc2   :  { %1753 = vmatpush1.bf16.msra.mxu0 %v1752_v61  ;;  %1881 = vmatpush1.bf16.msra.mxu1 %v1880_v63  ;;  %v1884_v63 = vpack.c.bf16 %v371_v52, %v367_v51  ;;  %v385_v52 = vld [vmem:[#allocation2 + $0x4a0] sm:$0xff] }
  0xc3   :  { %1755 = vmatprep.subr.bf16.mxu0 %v1754_v14  ;;  %1883 = vmatprep.subr.bf16.mxu1 %v1882_v1  ;;  %v373_v14 = vld [vmem:[#allocation2 + $0x440] sm:$0xff] }
 0x140   :  { %v117_v28 = vpop.xlane.xlu0 %116 }
 0x141   :  { %v133_v2 = vmul.f32 0.001953125, %v117_v28 }
 0x143   :  { %v137_v4 = vadd.f32 1e-05, %v133_v2 }
 0x144   :  { %v127_v5 = vpop.xlane.xlu0 %126 }
 0x145   :  { %2045 = vrsqrt.f32 %v137_v4  ;;  %v122_v29 = vpop.xlane.xlu1 %121  ;;  %v135_v7 = vmul.f32 0.001953125, %v127_v5  ;;  %v375_v4 = vld [vmem:[#allocation2 + $0x450] sm:$0xff] }
 0x146   :  { %v134_v32 = vmul.f32 0.001953125, %v122_v29  ;;  %v379_v5 = vld [vmem:[#allocation2 + $0x470] sm:$0xff] }
 0x147   :  { %v139_v33 = vadd.f32 1e-05, %v135_v7 }
 0x148   :  { %v138_v36 = vadd.f32 1e-05, %v134_v32  ;;  %v382_v32 = vld [vmem:[#allocation2 + $0x488] sm:$0xff] }
 0x149   :  { %2047 = vrsqrt.f32 %v139_v33  ;;  %v132_v37 = vpop.xlane.xlu1 %131  ;;  %v386_v33 = vld [vmem:[#allocation2 + $0x4a8] sm:$0xff] }
 0x14a   :  { %2049 = vrsqrt.f32 %v138_v36  ;;  %v136_v39 = vmul.f32 0.001953125, %v132_v37  ;;  %v1762_v50 = vpack.c.bf16 %v386_v33, %v382_v32  ;;  %v400_v32 = vld [vmem:[#allocation2 + $0x518] sm:$0xff] }
 0x14b   :  { %v404_v33 = vld [vmem:[#allocation2 + $0x538] sm:$0xff] }
 0x14c   :  { %v140_v13 = vadd.f32 1e-05, %v136_v39  ;;  %v1888_v39 = vpack.c.bf16 %v379_v5, %v375_v4  ;;  %v398_v5 = vld [vmem:[#allocation2 + $0x508] sm:$0xff] }
 0x14e   :  { %2051 = vrsqrt.f32 %v140_v13  ;;  %v384_v13 = vld [vmem:[#allocation2 + $0x498] sm:$0xff] }
 0x14f   :  { %v2393_v18 = vpop.eup %2045 }
 0x150   :  { %v146_v47 = vmul.f32 %v2393_v18, %v2296_v19  ;;  %v145_v48 = vmul.f32 %v2393_v18, %v2293_v15  ;;  %v147_v53 = vmul.f32 %v2393_v18, %v2299_v21  ;;  %v380_v15 = vld [vmem:[#allocation2 + $0x478] sm:$0xff] }
 0x151   :  { %v1886_v28 = vpack.c.bf16 %v380_v15, %v376_v58  ;;  %v390_v58 = vld [vmem:[#allocation2 + $0x4c8] sm:$0xff]  ;;  %v148_v15 = vmul.f32 %v2393_v18, %v2302_v22  ;;  %v389_v22 = vld [vmem:[#allocation2 + $0x4c0] sm:$0xff] }
 0x152   :  { %v184_v57 = vmul.f32 %v2385_v43, %v146_v47  ;;  %v183_v19 = vmul.f32 %v2391_v45, %v145_v48  ;;  %v185_v60 = vmul.f32 %v2388_v44, %v147_v53  ;;  %v381_v48 = vld [vmem:[#allocation2 + $0x480] sm:$0xff]  ;;  %v383_v53 = vld [vmem:[#allocation2 + $0x490] sm:$0xff] }
 0x153   :  { %v2415_v61 = vpop.eup %2047 }
 0x154   :  { %v2417_v21 = vpop.eup %2049  ;;  %v222_v3 = vadd.f32 %v2396_v24, %v184_v57  ;;  %v221_v8 = vadd.f32 %v2403_v49, %v183_v19  ;;  %v154_v26 = vmul.f32 %v2415_v61, %v2308_v25  ;;  %v2428_v29 = vadd.f32 %v2408_v54, %v185_v60 }
 0x155   :  { %v150_v1 = vmul.f32 %v2417_v21, %v2332_v31  ;;  %v149_v2 = vmul.f32 %v2417_v21, %v2329_v30  ;;  %v153_v7 = vmul.f32 %v2415_v61, %v2305_v23  ;;  %v2433_v25 = vrot.slane %v161_v42, %v2412_v59 }
 0x156   :  { %579 = vmatprep.mubr.f32.mxu0 %v222_v3  ;;  %757 = vmatprep.mubr.f32.mxu1 %v222_v3  ;;  %v2436_v31 = vrot.slane %v199_v20, %v2412_v59  ;;  %v151_v36 = vmul.f32 %v2417_v21, %v2345_v9  ;;  %v1760_v23 = vpack.c.bf16 %v377_v6, %v373_v14  ;;  %v388_v20 = vld [vmem:[#allocation2 + $0x4b8] sm:$0xff] }
 0x157   :  { %580 = vmatmul.mubr.f32.vlgmr.msra.gmra.mrb[0].mxu0 %v221_v8  ;;  %758 = vmatmul.mubr.f32.vlgmr.msra.gmra.mrb[0].mxu1 %v221_v8  ;;  %v188_v30 = vmul.f32 %v2385_v43, %v150_v1  ;;  %v187_v11 = vmul.f32 %v2391_v45, %v149_v2  ;;  %v192_v42 = vmul.f32 %v2385_v43, %v154_v26  ;;  %v396_v3 = vld [vmem:[#allocation2 + $0x4f8] sm:$0xff]  ;;  %v391_v1 = vld [vmem:[#allocation2 + $0x4d0] sm:$0xff] }
 0x158   :  { %v2442_v37 = vpop.eup %2051  ;;  %1757 = vmatpush1.bf16.msra.mxu0 %v1756_v62  ;;  %1885 = vmatpush1.bf16.msra.mxu1 %v1884_v63  ;;  %v191_v51 = vmul.f32 %v2391_v45, %v153_v7  ;;  %v189_v57 = vmul.f32 %v2388_v44, %v151_v36  ;;  %v1890_v19 = vpack.c.bf16 %v388_v20, %v384_v13  ;;  %v394_v63 = vld [vmem:[#allocation2 + $0x4e8] sm:$0xff]  ;;  %v399_v20 = vld [vmem:[#allocation2 + $0x510] sm:$0xff] }
 0x159   :  { %v226_v46 = vadd.f32 %v2396_v24, %v188_v30  ;;  %1759 = vmatprep.subr.bf16.mxu0 %v1758_v10  ;;  %1887 = vmatprep.subr.bf16.mxu1 %v1886_v28  ;;  %v225_v47 = vadd.f32 %v2403_v49, %v187_v11  ;;  %v158_v9 = vmul.f32 %v2442_v37, %v2340_v35  ;;  %v395_v28 = vld [vmem:[#allocation2 + $0x4f0] sm:$0xff]  ;;  %v402_v11 = vld [vmem:[#allocation2 + $0x528] sm:$0xff] }
 0x15a   :  { %v157_v56 = vmul.f32 %v2442_v37, %v2337_v34  ;;  %v155_v35 = vmul.f32 %v2415_v61, %v2311_v27  ;;  %v230_v60 = vadd.f32 %v2396_v24, %v192_v42  ;;  %v392_v34 = vld [vmem:[#allocation2 + $0x4d8] sm:$0xff]  ;;  %v2460_v8 = vadd.f32 %v2408_v54, %v189_v57  ;;  %v401_v42 = vld [vmem:[#allocation2 + $0x520] sm:$0xff] }
 0x15b   :  { %585 = vmatprep.mubr.f32.mxu0 %v226_v46  ;;  %763 = vmatprep.mubr.f32.mxu1 %v226_v46  ;;  %v196_v62 = vmul.f32 %v2385_v43, %v158_v9  ;;  %v1764_v10 = vpack.c.bf16 %v385_v52, %v381_v48  ;;  %v1892_v14 = vpack.c.bf16 %v387_v55, %v383_v53  ;;  %v393_v43 = vld [vmem:[#allocation2 + $0x4e0] sm:$0xff]  ;;  %v403_v46 = vld [vmem:[#allocation2 + $0x530] sm:$0xff]  ;;  %v410_v9 = vld [vmem:[#allocation2 + $0x568] sm:$0xff] }
 0x15c   :  { %586 = vmatmul.mubr.f32.gmra.mrb[2].mxu0 %v225_v47  ;;  %764 = vmatmul.mubr.f32.gmra.mrb[2].mxu1 %v225_v47  ;;  %v193_v18 = vmul.f32 %v2388_v44, %v155_v35  ;;  %v229_v27 = vadd.f32 %v2403_v49, %v191_v51  ;;  %v195_v26 = vmul.f32 %v2391_v45, %v157_v56  ;;  %v412_v51 = vld [vmem:[#allocation2 + $0x578] sm:$0xff]  ;;  %v405_v55 = vld [vmem:[#allocation2 + $0x540] sm:$0xff]  ;;  %v418_v35 = vld [vmem:[#allocation2 + $0x5a8] sm:$0xff] }
 0x15d   :  { %1761 = vmatpush1.bf16.msra.mxu0 %v1760_v23  ;;  %1889 = vmatpush1.bf16.msra.mxu1 %v1888_v39  ;;  %v159_v2 = vmul.f32 %v2442_v37, %v2355_v17  ;;  %v1766_v6 = vpack.c.bf16 %v394_v63, %v390_v58  ;;  %v1894_v4 = vpack.c.bf16 %v396_v3, %v392_v34  ;;  %v397_v39 = vld [vmem:[#allocation2 + $0x500] sm:$0xff]  ;;  %v411_v58 = vld [vmem:[#allocation2 + $0x570] sm:$0xff] }
 0x15e   :  { %591 = vmatprep.mubr.f32.mxu0 %v230_v60  ;;  %769 = vmatprep.mubr.f32.mxu1 %v230_v60  ;;  %v2468_v7 = vadd.f32 %v2408_v54, %v193_v18  ;;  %v234_v30 = vadd.f32 %v2396_v24, %v196_v62  ;;  %v186_v45 = vmul.f32 %v2433_v25, %v148_v15  ;;  %v406_v24 = vld [vmem:[#allocation2 + $0x548] sm:$0xff]  ;;  %v409_v56 = vld [vmem:[#allocation2 + $0x560] sm:$0xff]  ;;  %v416_v60 = vld [vmem:[#allocation2 + $0x598] sm:$0xff] }
 0x15f   :  { %1763 = vmatprep.subr.bf16.mxu0 %v1762_v50  ;;  %1891 = vmatprep.subr.bf16.mxu1 %v1890_v19  ;;  %v197_v36 = vmul.f32 %v2388_v44, %v159_v2  ;;  %v1768_v17 = vpack.c.bf16 %v393_v43, %v389_v22  ;;  %v1896_v23 = vpack.c.bf16 %v395_v28, %v391_v1  ;;  %v408_v50 = vld [vmem:[#allocation2 + $0x558] sm:$0xff]  ;;  %v407_v19 = vld [vmem:[#allocation2 + $0x550] sm:$0xff]  ;;  %v414_v15 = vld [vmem:[#allocation2 + $0x588] sm:$0xff] }
 0x160   :  { %592 = vmatmul.mubr.f32.gmra.mrb[4].mxu0 %v229_v27  ;;  %770 = vmatmul.mubr.f32.gmra.mrb[4].mxu1 %v229_v27  ;;  %v233_v13 = vadd.f32 %v2403_v49, %v195_v26  ;;  %v1770_v48 = vpack.c.bf16 %v402_v11, %v398_v5  ;;  %v1898_v44 = vpack.c.bf16 %v404_v33, %v400_v32  ;;  %v420_v62 = vld [vmem:[#allocation2 + $0x5b8] sm:$0xff]  ;;  %v413_v3 = vld [vmem:[#allocation2 + $0x580] sm:$0xff]  ;;  %v415_v18 = vld [vmem:[#allocation2 + $0x590] sm:$0xff] }
 0x161   :  { %1765 = vmatpush1.bf16.msra.mxu0 %v1764_v10  ;;  %1893 = vmatpush1.bf16.msra.mxu1 %v1892_v14  ;;  %v2475_v47 = vadd.f32 %v2408_v54, %v197_v36  ;;  %v224_v52 = vadd.f32 %v2436_v31, %v186_v45  ;;  %v1772_v49 = vpack.c.bf16 %v401_v42, %v397_v39  ;;  %v417_v10 = vld [vmem:[#allocation2 + $0x5a0] sm:$0xff]  ;;  %v419_v27 = vld [vmem:[#allocation2 + $0x5b0] sm:$0xff]  ;;  %v422_v26 = vld [vmem:[#allocation2 + $0x5c8] sm:$0xff] }
 0x162   :  { %597 = vmatprep.mubr.f32.mxu0 %v234_v30  ;;  %775 = vmatprep.mubr.f32.mxu1 %v234_v30  ;;  %v1900_v53 = vpack.c.bf16 %v403_v46, %v399_v20  ;;  %v1774_v54 = vpack.c.bf16 %v410_v9, %v406_v24  ;;  %v1902_v57 = vpack.c.bf16 %v412_v51, %v408_v50  ;;  %v426_v43 = vld [vmem:[#allocation2 + $0x5e8] sm:$0xff]  ;;  %v424_v1 = vld [vmem:[#allocation2 + $0x5d8] sm:$0xff]  ;;  %v425_v5 = vld [vmem:[#allocation2 + $0x5e0] sm:$0xff] }
 0x163   :  { %1767 = vmatprep.subr.bf16.mxu0 %v1766_v6  ;;  %1895 = vmatprep.subr.bf16.mxu1 %v1894_v4  ;;  %v1776_v63 = vpack.c.bf16 %v409_v56, %v405_v55  ;;  %v1904_v34 = vpack.c.bf16 %v411_v58, %v407_v19  ;;  %v1778_v14 = vpack.c.bf16 %v418_v35, %v414_v15  ;;  %v428_v28 = vld [vmem:[#allocation2 + $0x5f8] sm:$0xff]  ;;  %v421_v4 = vld [vmem:[#allocation2 + $0x5c0] sm:$0xff]  ;;  %v423_v11 = vld [vmem:[#allocation2 + $0x5d0] sm:$0xff] }
 0x164   :  { %598 = vmatmul.mubr.f32.gmra.mrb[6].mxu0 %v233_v13  ;;  %776 = vmatmul.mubr.f32.gmra.mrb[6].mxu1 %v233_v13  ;;  %v1906_v22 = vpack.c.bf16 %v420_v62, %v416_v60  ;;  %v1780_v2 = vpack.c.bf16 %v417_v10, %v413_v3  ;;  %v1908_v6 = vpack.c.bf16 %v419_v27, %v415_v18  ;;  %v427_v32 = vld [vmem:[#allocation2 + $0x5f0] sm:$0xff]  ;;  %v430_v33 = vld [vmem:[#allocation2 + $0x608] sm:$0xff]  ;;  %v429_v13 = vld [vmem:[#allocation2 + $0x600] sm:$0xff] }
 0x165   :  { %1769 = vmatpush1.bf16.msra.mxu0 %v1768_v17  ;;  %1897 = vmatpush1.bf16.msra.mxu1 %v1896_v23  ;;  %v1782_v30 = vpack.c.bf16 %v426_v43, %v422_v26  ;;  %v1910_v45 = vpack.c.bf16 %v428_v28, %v424_v1  ;;  %v434_v36 = vld [vmem:[#allocation2 + $0x628] sm:$0xff]  ;;  %v432_v17 = vld [vmem:[#allocation2 + $0x618] sm:$0xff]  ;;  %v1784_v39 = vpack.c.bf16 %v425_v5, %v421_v4  ;;  %v433_v20 = vld [vmem:[#allocation2 + $0x620] sm:$0xff] }
 0x166   :  { %668 = vmatprep.mubr.f32.mxu0 %v224_v52  ;;  %846 = vmatprep.mubr.f32.mxu1 %v224_v52  ;;  %v436_v23 = vld [vmem:[#allocation2 + $0x638] sm:$0xff]  ;;  %v1912_v42 = vpack.c.bf16 %v427_v32, %v423_v11  ;;  %v1786_v46 = vpack.c.bf16 %v434_v36, %v430_v33  ;;  %v438_v9 = vld [vmem:[#allocation2 + $0x648] sm:$0xff]  ;;  %v437_v55 = vld [vmem:[#allocation2 + $0x640] sm:$0xff] }
 0x167   :  { %1771 = vmatprep.subr.bf16.mxu0 %v1770_v48  ;;  %1899 = vmatprep.subr.bf16.mxu1 %v1898_v44  ;;  %v1914_v24 = vpack.c.bf16 %v436_v23, %v432_v17  ;;  %v431_v48 = vld [vmem:[#allocation2 + $0x610] sm:$0xff]  ;;  %v442_v50 = vld [vmem:[#allocation2 + $0x668] sm:$0xff]  ;;  %v440_v51 = vld [vmem:[#allocation2 + $0x658] sm:$0xff] }
 0x168   :  { %v435_v44 = vld [vmem:[#allocation2 + $0x630] sm:$0xff]  ;;  %v444_v52 = vld [vmem:[#allocation2 + $0x678] sm:$0xff]  ;;  %v441_v56 = vld [vmem:[#allocation2 + $0x660] sm:$0xff] }
 0x169   :  { %1773 = vmatpush1.bf16.msra.mxu0 %v1772_v49  ;;  %1901 = vmatpush1.bf16.msra.mxu1 %v1900_v53  ;;  %v1788_v49 = vpack.c.bf16 %v433_v20, %v429_v13  ;;  %v1916_v53 = vpack.c.bf16 %v435_v44, %v431_v48  ;;  %v439_v19 = vld [vmem:[#allocation2 + $0x650] sm:$0xff]  ;;  %v446_v15 = vld [vmem:[#allocation2 + $0x688] sm:$0xff]  ;;  %v448_v60 = vld [vmem:[#allocation2 + $0x698] sm:$0xff] }
 0x16a   :  { %1775 = vmatprep.subr.bf16.mxu0 %v1774_v54  ;;  %1903 = vmatprep.subr.bf16.mxu1 %v1902_v57  ;;  %v1790_v54 = vpack.c.bf16 %v442_v50, %v438_v9  ;;  %v1918_v57 = vpack.c.bf16 %v444_v52, %v440_v51  ;;  %v443_v58 = vld [vmem:[#allocation2 + $0x670] sm:$0xff]  ;;  %v450_v35 = vld [vmem:[#allocation2 + $0x6a8] sm:$0xff]  ;;  %v452_v62 = vld [vmem:[#allocation2 + $0x6b8] sm:$0xff] }
 0x16b   :  { %v445_v3 = vld [vmem:[#allocation2 + $0x680] sm:$0xff]  ;;  %v447_v18 = vld [vmem:[#allocation2 + $0x690] sm:$0xff]  ;;  %v454_v26 = vld [vmem:[#allocation2 + $0x6c8] sm:$0xff] }
 0x16c   :  { %v449_v10 = vld [vmem:[#allocation2 + $0x6a0] sm:$0xff]  ;;  %v451_v27 = vld [vmem:[#allocation2 + $0x6b0] sm:$0xff]  ;;  %v458_v43 = vld [vmem:[#allocation2 + $0x6e8] sm:$0xff] }
 0x16d   :  { %1777 = vmatpush1.bf16.msra.mxu0 %v1776_v63  ;;  %1905 = vmatpush1.bf16.msra.mxu1 %v1904_v34  ;;  %v1792_v63 = vpack.c.bf16 %v441_v56, %v437_v55  ;;  %v1920_v34 = vpack.c.bf16 %v443_v58, %v439_v19  ;;  %v456_v1 = vld [vmem:[#allocation2 + $0x6d8] sm:$0xff]  ;;  %v453_v4 = vld [vmem:[#allocation2 + $0x6c0] sm:$0xff]  ;;  %v455_v11 = vld [vmem:[#allocation2 + $0x6d0] sm:$0xff] }
 0x16e   :  { %1779 = vmatprep.subr.bf16.mxu0 %v1778_v14  ;;  %1907 = vmatprep.subr.bf16.mxu1 %v1906_v22  ;;  %v1794_v14 = vpack.c.bf16 %v450_v35, %v446_v15  ;;  %v1922_v22 = vpack.c.bf16 %v452_v62, %v448_v60  ;;  %v460_v28 = vld [vmem:[#allocation2 + $0x6f8] sm:$0xff]  ;;  %v457_v5 = vld [vmem:[#allocation2 + $0x6e0] sm:$0xff]  ;;  %v459_v32 = vld [vmem:[#allocation2 + $0x6f0] sm:$0xff] }
 0x16f   :  { %v462_v33 = vld [vmem:[#allocation2 + $0x708] sm:$0xff]  ;;  %v464_v17 = vld [vmem:[#allocation2 + $0x718] sm:$0xff]  ;;  %v461_v13 = vld [vmem:[#allocation2 + $0x700] sm:$0xff] }
 0x170   :  { %v466_v36 = vld [vmem:[#allocation2 + $0x728] sm:$0xff]  ;;  %v468_v23 = vld [vmem:[#allocation2 + $0x738] sm:$0xff]  ;;  %v465_v20 = vld [vmem:[#allocation2 + $0x720] sm:$0xff] }
 0x171   :  { %1781 = vmatpush1.bf16.msra.mxu0 %v1780_v2  ;;  %1909 = vmatpush1.bf16.msra.mxu1 %v1908_v6  ;;  %v1796_v2 = vpack.c.bf16 %v449_v10, %v445_v3  ;;  %v1924_v6 = vpack.c.bf16 %v451_v27, %v447_v18  ;;  %v463_v48 = vld [vmem:[#allocation2 + $0x710] sm:$0xff]  ;;  %v470_v9 = vld [vmem:[#allocation2 + $0x748] sm:$0xff]  ;;  %v472_v51 = vld [vmem:[#allocation2 + $0x758] sm:$0xff] }
 0x172   :  { %1783 = vmatprep.subr.bf16.mxu0 %v1782_v30  ;;  %1911 = vmatprep.subr.bf16.mxu1 %v1910_v45  ;;  %v1798_v30 = vpack.c.bf16 %v458_v43, %v454_v26  ;;  %v1926_v45 = vpack.c.bf16 %v460_v28, %v456_v1  ;;  %v467_v44 = vld [vmem:[#allocation2 + $0x730] sm:$0xff]  ;;  %v474_v50 = vld [vmem:[#allocation2 + $0x768] sm:$0xff]  ;;  %v476_v52 = vld [vmem:[#allocation2 + $0x778] sm:$0xff] }
 0x173   :  { %v469_v55 = vld [vmem:[#allocation2 + $0x740] sm:$0xff]  ;;  %v471_v19 = vld [vmem:[#allocation2 + $0x750] sm:$0xff]  ;;  %v478_v15 = vld [vmem:[#allocation2 + $0x788] sm:$0xff] }
 0x174   :  { %v473_v56 = vld [vmem:[#allocation2 + $0x760] sm:$0xff]  ;;  %v475_v58 = vld [vmem:[#allocation2 + $0x770] sm:$0xff]  ;;  %v482_v35 = vld [vmem:[#allocation2 + $0x7a8] sm:$0xff] }
 0x175   :  { %1785 = vmatpush1.bf16.msra.mxu0 %v1784_v39  ;;  %1913 = vmatpush1.bf16.msra.mxu1 %v1912_v42  ;;  %v1800_v39 = vpack.c.bf16 %v457_v5, %v453_v4  ;;  %v1928_v42 = vpack.c.bf16 %v459_v32, %v455_v11  ;;  %v480_v60 = vld [vmem:[#allocation2 + $0x798] sm:$0xff]  ;;  %v477_v3 = vld [vmem:[#allocation2 + $0x780] sm:$0xff]  ;;  %v479_v18 = vld [vmem:[#allocation2 + $0x790] sm:$0xff] }
 0x176   :  { %1787 = vmatprep.subr.bf16.mxu0 %v1786_v46  ;;  %1915 = vmatprep.subr.bf16.mxu1 %v1914_v24  ;;  %v1802_v46 = vpack.c.bf16 %v466_v36, %v462_v33  ;;  %v1930_v24 = vpack.c.bf16 %v468_v23, %v464_v17  ;;  %v484_v62 = vld [vmem:[#allocation2 + $0x7b8] sm:$0xff]  ;;  %v481_v10 = vld [vmem:[#allocation2 + $0x7a0] sm:$0xff]  ;;  %v483_v27 = vld [vmem:[#allocation2 + $0x7b0] sm:$0xff]  ;;  %v152_v33 = vmul.f32 %v2417_v21, %v2348_v12 }
 0x177   :  { %v486_v26 = vld [vmem:[#allocation2 + $0x7c8] sm:$0xff]  ;;  %v488_v1 = vld [vmem:[#allocation2 + $0x7d8] sm:$0xff]  ;;  %v485_v4 = vld [vmem:[#allocation2 + $0x7c0] sm:$0xff]  ;;  %v160_v12 = vmul.f32 %v2442_v37, %v2358_v41 }
 0x178   :  { %v490_v43 = vld [vmem:[#allocation2 + $0x7e8] sm:$0xff]  ;;  %v492_v28 = vld [vmem:[#allocation2 + $0x7f8] sm:$0xff]  ;;  %v487_v11 = vld [vmem:[#allocation2 + $0x7d0] sm:$0xff]  ;;  %v190_v23 = vmul.f32 %v2433_v25, %v152_v33 }
 0x179   :  { %1789 = vmatpush1.bf16.msra.mxu0 %v1788_v49  ;;  %1917 = vmatpush1.bf16.msra.mxu1 %v1916_v53  ;;  %v1804_v49 = vpack.c.bf16 %v465_v20, %v461_v13  ;;  %v1932_v53 = vpack.c.bf16 %v467_v44, %v463_v48  ;;  %v1814_v5 = vpack.c.bf16 %v490_v43, %v486_v26  ;;  %v491_v32 = vld [vmem:[#allocation2 + $0x7f0] sm:$0xff]  ;;  %v1335_v41 = vld [vmem:[%s3119_s5 + $0x80] sm:$0xff]  ;;  %v1342_v26 = vld [vmem:[%s3119_s5 + $0xb8] sm:$0xff] }
 0x17a   :  { %1791 = vmatprep.subr.bf16.mxu0 %v1790_v54  ;;  %1919 = vmatprep.subr.bf16.mxu1 %v1918_v57  ;;  %v1806_v54 = vpack.c.bf16 %v474_v50, %v470_v9  ;;  %v1934_v57 = vpack.c.bf16 %v476_v52, %v472_v51  ;;  %v1944_v17 = vpack.c.bf16 %v491_v32, %v487_v11  ;;  %v1319_v37 = vld [vmem:[%s3119_s5] sm:$0xff]  ;;  %v1337_v44 = vld [vmem:[%s3119_s5 + $0x90] sm:$0xff]  ;;  %v1338_v9 = vld [vmem:[%s3119_s5 + $0x98] sm:$0xff] }
 0x17b   :  { %v198_v20 = vmul.f32 %v2433_v25, %v160_v12  ;;  %v1369_v50 = vld [vmem:[%s3119_s5 + $0x190] sm:$0xff]  ;;  %v1950_v51 = vpack.c.bf16 %v1338_v9, %v1337_v44  ;;  %v1370_v52 = vld [vmem:[%s3119_s5 + $0x198] sm:$0xff]  ;;  %v1343_v11 = vld [vmem:[%s3119_s5 + $0xc0] sm:$0xff] }
 0x17c   :  { %v1373_v43 = vld [vmem:[%s3119_s5 + $0x1b0] sm:$0xff]  ;;  %v1344_v32 = vld [vmem:[%s3119_s5 + $0xc8] sm:$0xff]  ;;  %v1359_v12 = vld [vmem:[%s3119_s5 + $0x140] sm:$0xff] }
 0x17d   :  { %1793 = vmatpush1.bf16.msra.mxu0 %v1792_v63  ;;  %1921 = vmatpush1.bf16.msra.mxu1 %v1920_v34  ;;  %v1808_v63 = vpack.c.bf16 %v473_v56, %v469_v55  ;;  %v1936_v34 = vpack.c.bf16 %v475_v58, %v471_v19  ;;  %v1982_v55 = vpack.c.bf16 %v1370_v52, %v1369_v50  ;;  %v1339_v58 = vld [vmem:[%s3119_s5 + $0xa0] sm:$0xff]  ;;  %v1380_v9 = vld [vmem:[%s3119_s5 + $0x1e8] sm:$0xff] }
 0x17e   :  { %1795 = vmatprep.subr.bf16.mxu0 %v1794_v14  ;;  %1923 = vmatprep.subr.bf16.mxu1 %v1922_v22  ;;  %v1810_v14 = vpack.c.bf16 %v482_v35, %v478_v15  ;;  %v1938_v22 = vpack.c.bf16 %v484_v62, %v480_v60  ;;  %v1340_v15 = vld [vmem:[%s3119_s5 + $0xa8] sm:$0xff]  ;;  %v1371_v35 = vld [vmem:[%s3119_s5 + $0x1a0] sm:$0xff] }
 0x17f   :  { %v1954_v60 = vpack.c.bf16 %v1340_v15, %v1339_v58  ;;  %v1372_v62 = vld [vmem:[%s3119_s5 + $0x1a8] sm:$0xff]  ;;  %v1379_v44 = vld [vmem:[%s3119_s5 + $0x1e0] sm:$0xff]  ;;  %v1381_v58 = vld [vmem:[%s3119_s5 + $0x1f0] sm:$0xff] }
 0x180   :  { %v1382_v15 = vld [vmem:[%s3119_s5 + $0x1f8] sm:$0xff] }
 0x181   :  { %1797 = vmatpush1.bf16.msra.mxu0 %v1796_v2  ;;  %1925 = vmatpush1.bf16.msra.mxu1 %v1924_v6  ;;  %v1812_v2 = vpack.c.bf16 %v481_v10, %v477_v3  ;;  %v1940_v6 = vpack.c.bf16 %v483_v27, %v479_v18  ;;  %v1986_v3 = vpack.c.bf16 %v1372_v62, %v1371_v35  ;;  %v1341_v18 = vld [vmem:[%s3119_s5 + $0xb0] sm:$0xff] }
 0x182   :  { %1799 = vmatprep.subr.bf16.mxu0 %v1798_v30  ;;  %1927 = vmatprep.subr.bf16.mxu1 %v1926_v45  ;;  %v1942_v30 = vpack.c.bf16 %v492_v28, %v488_v1  ;;  %v489_v45 = vld [vmem:[#allocation2 + $0x7e0] sm:$0xff]  ;;  %v1374_v1 = vld [vmem:[%s3119_s5 + $0x1b8] sm:$0xff]  ;;  %v1958_v28 = vpack.c.bf16 %v1342_v26, %v1341_v18 }
 0x183   :  { %v1816_v36 = vpack.c.bf16 %v489_v45, %v485_v4  ;;  %v1326_v4 = vld [vmem:[%s3119_s5 + $0x38] sm:$0xff] }
 0x184   :  { %v1358_v45 = vld [vmem:[%s3119_s5 + $0x138] sm:$0xff] }
 0x185   :  { %1801 = vmatpush1.bf16.msra.mxu0 %v1800_v39  ;;  %1929 = vmatpush1.bf16.msra.mxu1 %v1928_v42  ;;  %v156_v39 = vmul.f32 %v2415_v61, %v2314_v0  ;;  %v228_v42 = vadd.f32 %v2436_v31, %v190_v23  ;;  %v236_v0 = vadd.f32 %v2436_v31, %v198_v20  ;;  %v1336_v61 = vld [vmem:[%s3119_s5 + $0x88] sm:$0xff] }
 0x186   :  { %1803 = vmatprep.subr.bf16.mxu0 %v1802_v46  ;;  %1931 = vmatprep.subr.bf16.mxu1 %v1930_v24  ;;  %v1351_v46 = vld [vmem:[%s3119_s5 + $0x100] sm:$0xff]  ;;  %v1352_v24 = vld [vmem:[%s3119_s5 + $0x108] sm:$0xff] }
 0x187   :  { %v194_v13 = vmul.f32 %v2433_v25, %v156_v39  ;;  %v1946_v25 = vpack.c.bf16 %v1336_v61, %v1335_v41  ;;  %v1980_v48 = vpack.c.bf16 %v1352_v24, %v1351_v46  ;;  %v1376_v23 = vld [vmem:[%s3119_s5 + $0x1c8] sm:$0xff]  ;;  %v1327_v39 = vld [vmem:[%s3119_s5 + $0x40] sm:$0xff]  ;;  %v1346_v41 = vld [vmem:[%s3119_s5 + $0xd8] sm:$0xff] }
 0x188   :  { %v1377_v61 = vld [vmem:[%s3119_s5 + $0x1d0] sm:$0xff]  ;;  %v1362_v46 = vld [vmem:[%s3119_s5 + $0x158] sm:$0xff]  ;;  %v1347_v24 = vld [vmem:[%s3119_s5 + $0xe0] sm:$0xff] }
 0x189   :  { %1805 = vmatpush1.bf16.msra.mxu0 %v1804_v49  ;;  %1933 = vmatpush1.bf16.msra.mxu1 %v1932_v53  ;;  %v232_v21 = vadd.f32 %v2436_v31, %v194_v13  ;;  %v1368_v31 = vld [vmem:[%s3119_s5 + $0x188] sm:$0xff]  ;;  %v1321_v49 = vld [vmem:[%s3119_s5 + $0x10] sm:$0xff]  ;;  %v1322_v53 = vld [vmem:[%s3119_s5 + $0x18] sm:$0xff] }
 0x18a   :  { %1807 = vmatprep.subr.bf16.mxu0 %v1806_v54  ;;  %1935 = vmatprep.subr.bf16.mxu1 %v1934_v57  ;;  %v1952_v56 = vpack.c.bf16 %v1322_v53, %v1321_v49  ;;  %v1353_v54 = vld [vmem:[%s3119_s5 + $0x110] sm:$0xff]  ;;  %v1354_v57 = vld [vmem:[%s3119_s5 + $0x118] sm:$0xff]  ;;  %v1328_v13 = vld [vmem:[%s3119_s5 + $0x48] sm:$0xff] }
 0x18b   :  { %v1984_v19 = vpack.c.bf16 %v1354_v57, %v1353_v54  ;;  %v1964_v20 = vpack.c.bf16 %v1328_v13, %v1327_v39  ;;  %v1331_v49 = vld [vmem:[%s3119_s5 + $0x60] sm:$0xff]  ;;  %v1332_v53 = vld [vmem:[%s3119_s5 + $0x68] sm:$0xff]  ;;  %v1349_v57 = vld [vmem:[%s3119_s5 + $0xf0] sm:$0xff] }
 0x18c   :  { %v1364_v54 = vld [vmem:[%s3119_s5 + $0x168] sm:$0xff]  ;;  %v1972_v35 = vpack.c.bf16 %v1332_v53, %v1331_v49 }
 0x18d   :  { %1809 = vmatpush1.bf16.msra.mxu0 %v1808_v63  ;;  %1937 = vmatpush1.bf16.msra.mxu1 %v1936_v34  ;;  %v1323_v63 = vld [vmem:[%s3119_s5 + $0x20] sm:$0xff]  ;;  %v1324_v34 = vld [vmem:[%s3119_s5 + $0x28] sm:$0xff] }
 0x18e   :  { %1811 = vmatprep.subr.bf16.mxu0 %v1810_v14  ;;  %1939 = vmatprep.subr.bf16.mxu1 %v1938_v22  ;;  %v1956_v10 = vpack.c.bf16 %v1324_v34, %v1323_v63  ;;  %v1355_v14 = vld [vmem:[%s3119_s5 + $0x120] sm:$0xff]  ;;  %v1356_v22 = vld [vmem:[%s3119_s5 + $0x128] sm:$0xff]  ;;  %v1333_v63 = vld [vmem:[%s3119_s5 + $0x70] sm:$0xff] }
 0x18f   :  { %v1988_v27 = vpack.c.bf16 %v1356_v22, %v1355_v14  ;;  %v1334_v34 = vld [vmem:[%s3119_s5 + $0x78] sm:$0xff] }
 0x190   :  { %v1366_v14 = vld [vmem:[%s3119_s5 + $0x178] sm:$0xff]  ;;  %v1976_v22 = vpack.c.bf16 %v1334_v34, %v1333_v63 }
 0x191   :  { %1813 = vmatpush1.bf16.msra.mxu0 %v1812_v2  ;;  %1941 = vmatpush1.bf16.msra.mxu1 %v1940_v6  ;;  %v1990_v2 = vpack.c.bf16 %v1374_v1, %v1373_v43  ;;  %v1325_v6 = vld [vmem:[%s3119_s5 + $0x30] sm:$0xff] }
 0x192   :  { %1815 = vmatprep.subr.bf16.mxu0 %v1814_v5  ;;  %1943 = vmatprep.subr.bf16.mxu1 %v1942_v30  ;;  %v1357_v5 = vld [vmem:[%s3119_s5 + $0x130] sm:$0xff]  ;;  %v1960_v30 = vpack.c.bf16 %v1326_v4, %v1325_v6 }
 0x193   :  { %v1992_v33 = vpack.c.bf16 %v1358_v45, %v1357_v5 }
 0x195   :  { %1817 = vmatpush1.bf16.msra.mxu0 %v1816_v36  ;;  %1945 = vmatpush1.bf16.msra.mxu1 %v1944_v17  ;;  %v1962_v36 = vpack.c.bf16 %v1344_v32, %v1343_v11  ;;  %v1375_v17 = vld [vmem:[%s3119_s5 + $0x1c0] sm:$0xff] }
 0x196   :  { %1947 = vmatprep.subr.bf16.mxu0 %v1946_v25 }
 0x198   :  { %669 = vmatmul.mubr.f32.vlgmr.msra.gmra.mrb[0].mxu0 %v2428_v29  ;;  %847 = vmatmul.mubr.f32.vlgmr.msra.gmra.mrb[0].mxu1 %v2428_v29  ;;  %v1367_v29 = vld [vmem:[%s3119_s5 + $0x180] sm:$0xff] }
 0x199   :  { %674 = vmatprep.mubr.f32.mxu0 %v228_v42  ;;  %852 = vmatprep.mubr.f32.mxu1 %v228_v42  ;;  %v1994_v42 = vpack.c.bf16 %v1376_v23, %v1375_v17 }
 0x19c   :  { %675 = vmatmul.mubr.f32.gmra.mrb[2].mxu0 %v2460_v8  ;;  %853 = vmatmul.mubr.f32.gmra.mrb[2].mxu1 %v2460_v8  ;;  %v1320_v8 = vld [vmem:[%s3119_s5 + $0x8] sm:$0xff] }
 0x19d   :  { %680 = vmatprep.mubr.f32.mxu0 %v232_v21  ;;  %858 = vmatprep.mubr.f32.mxu1 %v232_v21  ;;  %v1360_v21 = vld [vmem:[%s3119_s5 + $0x148] sm:$0xff] }
 0x1a0   :  { %681 = vmatmul.mubr.f32.gmra.mrb[4].mxu0 %v2468_v7  ;;  %859 = vmatmul.mubr.f32.gmra.mrb[4].mxu1 %v2468_v7  ;;  %v1978_v7 = vpack.c.bf16 %v1368_v31, %v1367_v29  ;;  %v1996_v29 = vpack.c.bf16 %v1360_v21, %v1359_v12  ;;  %v1378_v31 = vld [vmem:[%s3119_s5 + $0x1d8] sm:$0xff] }
 0x1a1   :  { %686 = vmatprep.mubr.f32.mxu0 %v236_v0  ;;  %864 = vmatprep.mubr.f32.mxu1 %v236_v0  ;;  %v1345_v0 = vld [vmem:[%s3119_s5 + $0xd0] sm:$0xff] }
 0x1a2   :  { %1979 = vmatprep.subr.bf16.mxu1 %v1978_v7  ;;  %v1966_v25 = vpack.c.bf16 %v1346_v41, %v1345_v0  ;;  %v1998_v7 = vpack.c.bf16 %v1378_v31, %v1377_v61 }
 0x1a3   :  { %1981 = vmatpush3.bf16.msra.mxu1 %v1980_v48  ;;  %v1348_v48 = vld [vmem:[%s3119_s5 + $0xe8] sm:$0xff] }
 0x1a4   :  { %687 = vmatmul.mubr.f32.gmra.mrb[6].mxu0 %v2475_v47  ;;  %865 = vmatmul.mubr.f32.gmra.mrb[6].mxu1 %v2475_v47  ;;  %v1948_v47 = vpack.c.bf16 %v1320_v8, %v1319_v37  ;;  %v1329_v37 = vld [vmem:[%s3119_s5 + $0x50] sm:$0xff]  ;;  %v1330_v8 = vld [vmem:[%s3119_s5 + $0x58] sm:$0xff]  ;;  %v1970_v52 = vpack.c.bf16 %v1348_v48, %v1347_v24 }
 0x1a5   :  { %1983 = vmatprep.subr.bf16.mxu1 %v1982_v55  ;;  %v1968_v50 = vpack.c.bf16 %v1330_v8, %v1329_v37  ;;  %v1363_v55 = vld [vmem:[%s3119_s5 + $0x160] sm:$0xff] }
 0x1a6   :  { %1949 = vmatpush3.bf16.msra.mxu0 %v1948_v47  ;;  %v1361_v47 = vld [vmem:[%s3119_s5 + $0x150] sm:$0xff] }
 0x1a7   :  { %1951 = vmatprep.subr.bf16.mxu0 %v1950_v51  ;;  %1985 = vmatpush3.bf16.msra.mxu1 %v1984_v19  ;;  %v2000_v51 = vpack.c.bf16 %v1362_v46, %v1361_v47  ;;  %v1350_v19 = vld [vmem:[%s3119_s5 + $0xf8] sm:$0xff] }
 0x1a8   :  { %1987 = vmatprep.subr.bf16.mxu1 %v1986_v3  ;;  %v1974_v62 = vpack.c.bf16 %v1350_v19, %v1349_v57  ;;  %v2006_v3 = vpack.c.bf16 %v1382_v15, %v1381_v58 }
 0x1aa   :  { %1953 = vmatpush3.bf16.msra.mxu0 %v1952_v56  ;;  %v2002_v56 = vpack.c.bf16 %v1380_v9, %v1379_v44 }
 0x1ab   :  { %1955 = vmatprep.subr.bf16.mxu0 %v1954_v60  ;;  %1989 = vmatpush3.bf16.msra.mxu1 %v1988_v27  ;;  %v2004_v60 = vpack.c.bf16 %v1364_v54, %v1363_v55  ;;  %v493_v27 = vld [vmem:[%s3118_s4] sm:$0xf] }
 0x1ac   :  { %1991 = vmatprep.subr.bf16.mxu1 %v1990_v2  ;;  %v2694_v26 = vrot.slane %v493_v27, %v2376_v16  ;;  %v2697_v43 = vrot.slane %v493_v27, %v2374_v40  ;;  %v2700_v1 = vrot.slane %v493_v27, %v2372_v38 }
 0x1ae   :  { %1957 = vmatpush3.bf16.msra.mxu0 %v1956_v10  ;;  %v1365_v10 = vld [vmem:[%s3119_s5 + $0x170] sm:$0xff] }
 0x1af   :  { %1959 = vmatprep.subr.bf16.mxu0 %v1958_v28  ;;  %1993 = vmatpush3.bf16.msra.mxu1 %v1992_v33  ;;  %v2008_v18 = vpack.c.bf16 %v1366_v14, %v1365_v10  ;;  %v2703_v28 = vrot.slane %v493_v27, %v2412_v59 }
 0x1b0   :  { %1995 = vmatprep.subr.bf16.mxu1 %v1994_v42 }
 0x1b2   :  { %1961 = vmatpush3.bf16.msra.mxu0 %v1960_v30 }
 0x1b3   :  { %1963 = vmatprep.subr.bf16.mxu0 %v1962_v36  ;;  %1997 = vmatpush3.bf16.msra.mxu1 %v1996_v29 }
 0x1b4   :  { %1999 = vmatprep.subr.bf16.mxu1 %v1998_v7 }
 0x1b6   :  { %1965 = vmatpush3.bf16.msra.mxu0 %v1964_v20 }
 0x1b7   :  { %1967 = vmatprep.subr.bf16.mxu0 %v1966_v25  ;;  %2001 = vmatpush3.bf16.msra.mxu1 %v2000_v51 }
 0x1b8   :  { %2003 = vmatprep.subr.bf16.mxu1 %v2002_v56 }
 0x1ba   :  { %1969 = vmatpush3.bf16.msra.mxu0 %v1968_v50 }
 0x1bb   :  { %1971 = vmatprep.subr.bf16.mxu0 %v1970_v52  ;;  %2005 = vmatpush3.bf16.msra.mxu1 %v2004_v60 }
 0x1bc   :  { %2007 = vmatprep.subr.bf16.mxu1 %v2006_v3 }
 0x1be   :  { %1973 = vmatpush3.bf16.msra.mxu0 %v1972_v35 }
 0x1bf   :  { %1975 = vmatprep.subr.bf16.mxu0 %v1974_v62  ;;  %2009 = vmatpush3.bf16.msra.mxu1 %v2008_v18 }
 0x1c2   :  { %1977 = vmatpush3.bf16.msra.mxu0 %v1976_v22 }
 0x26b   :  { %v670_v2 = vpop.f32.mrb[0].mxu0  ;;  %v848_v6 = vpop.f32.mrb[0].mxu1 }
 0x26c   :  { %v2706_v4 = vadd.f32 %v670_v2, %v2694_v26  ;;  %v2709_v5 = vadd.f32 %v848_v6, %v2697_v43  ;;  %v672_v30 = vpop.f32.mrb[1].mxu0  ;;  %v850_v16 = vpop.f32.mrb[1].mxu1 }
 0x26d   :  { %v2712_v45 = vadd.f32 %v672_v30, %v2700_v1  ;;  %v2715_v40 = vadd.f32 %v850_v16, %v2703_v28 }
 0x26e   :  { %v2718_v38 = vmul.f32 0.70710677, %v2706_v4  ;;  %v2721_v59 = vmul.f32 0.70710677, %v2709_v5 }
 0x26f   :  { %v2724_v11 = vmul.f32 0.70710677, %v2712_v45  ;;  %v2727_v32 = vmul.f32 0.70710677, %v2715_v40  ;;  %v676_v17 = vpop.f32.mrb[2].mxu0  ;;  %v854_v23 = vpop.f32.mrb[2].mxu1 }
 0x270   :  { %v903_v33 = vsub.f32 0.0, %v2718_v38  ;;  %v905_v36 = vsub.f32 0.0, %v2721_v59  ;;  %v678_v42 = vpop.f32.mrb[3].mxu0  ;;  %v856_v13 = vpop.f32.mrb[3].mxu1  ;;  %v2739_v8 = vadd.f32 %v676_v17, %v2694_v26  ;;  %v2743_v24 = vadd.f32 %v854_v23, %v2697_v43 }
 0x271   :  { %v904_v39 = vsub.f32 0.0, %v2724_v11  ;;  %v906_v20 = vsub.f32 0.0, %v2727_v32  ;;  %v2750_v9 = vadd.f32 %v678_v42, %v2700_v1  ;;  %v2765_v58 = vadd.f32 %v856_v13, %v2703_v28 }
 0x272   :  { %v919_v12 = vmax.f32 %v2718_v38, %v903_v33  ;;  %v921_v21 = vmax.f32 %v2721_v59, %v905_v36  ;;  %v2759_v56 = vmul.f32 0.70710677, %v2739_v8  ;;  %v2762_v19 = vmul.f32 0.70710677, %v2743_v24 }
 0x273   :  { %v682_v0 = vpop.f32.mrb[4].mxu0  ;;  %v2735_v41 = vpop.f32.mrb[4].mxu1  ;;  %v920_v31 = vmax.f32 %v2724_v11, %v904_v39  ;;  %v922_v46 = vmax.f32 %v2727_v32, %v906_v20  ;;  %v2771_v60 = vmul.f32 0.70710677, %v2750_v9  ;;  %v2778_v6 = vmul.f32 0.70710677, %v2765_v58 }
 0x274   :  { %v935_v61 = vmul.f32 0.3275911, %v919_v12  ;;  %v1143_v29 = vsub.f32 0.0, %v919_v12  ;;  %v937_v25 = vmul.f32 0.3275911, %v921_v21  ;;  %v1145_v37 = vsub.f32 0.0, %v921_v21 }
 0x275   :  { %v2745_v48 = vpop.f32.mrb[5].mxu0  ;;  %v2747_v44 = vpop.f32.mrb[5].mxu1  ;;  %v1144_v49 = vsub.f32 0.0, %v920_v31  ;;  %v936_v54 = vmul.f32 0.3275911, %v920_v31  ;;  %v1146_v57 = vsub.f32 0.0, %v922_v46  ;;  %v2785_v20 = vadd.f32 %v682_v0, %v2694_v26 }
 0x276   :  { %v951_v7 = vadd.f32 1.0, %v935_v61  ;;  %v953_v47 = vadd.f32 1.0, %v937_v25  ;;  %v1159_v52 = vmul.f32 %v1143_v29, %v919_v12  ;;  %v1161_v55 = vmul.f32 %v1145_v37, %v921_v21 }
 0x277   :  { %v2752_v50 = vpop.f32.mrb[6].mxu0  ;;  %v2754_v51 = vpop.f32.mrb[6].mxu1  ;;  %v907_v35 = vsub.f32 0.0, %v2759_v56  ;;  %v1160_v63 = vmul.f32 %v1144_v49, %v920_v31  ;;  %v909_v34 = vsub.f32 0.0, %v2762_v19  ;;  %v938_v10 = vmul.f32 0.3275911, %v922_v46 }
 0x278   :  { %2053 = vrcp.f32 %v951_v7  ;;  %v2756_v53 = vpop.f32.mrb[7].mxu0  ;;  %v2767_v15 = vpop.f32.mrb[7].mxu1  ;;  %v1175_v62 = vmul.f32 1.442695, %v1159_v52  ;;  %v1179_v3 = vmul.f32 1.442695, %v1161_v55  ;;  %v1162_v27 = vmul.f32 %v1146_v57, %v922_v46 }
 0x279   :  { %2055 = vrcp.f32 %v953_v47  ;;  %v923_v14 = vmax.f32 %v2759_v56, %v907_v35  ;;  %v908_v22 = vsub.f32 0.0, %v2771_v60  ;;  %v952_v18 = vadd.f32 1.0, %v936_v54 }
 0x27a   :  { %v925_v2 = vmax.f32 %v2762_v19, %v909_v34  ;;  %2057 = vpow2.f32 %v1175_v62  ;;  %v1177_v36 = vmul.f32 1.442695, %v1160_v63  ;;  %v954_v39 = vadd.f32 1.0, %v938_v10 }
 0x27b   :  { %v939_v30 = vmul.f32 0.3275911, %v923_v14  ;;  %v1147_v16 = vsub.f32 0.0, %v923_v14  ;;  %v924_v33 = vmax.f32 %v2771_v60, %v908_v22  ;;  %2059 = vpow2.f32 %v1179_v3 }
 0x27c   :  { %v941_v17 = vmul.f32 0.3275911, %v925_v2  ;;  %v1149_v23 = vsub.f32 0.0, %v925_v2  ;;  %v910_v13 = vsub.f32 0.0, %v2778_v6  ;;  %2061 = vrcp.f32 %v952_v18 }
 0x27d   :  { %v1163_v42 = vmul.f32 %v1147_v16, %v923_v14  ;;  %v1181_v21 = vmul.f32 1.442695, %v1162_v27  ;;  %v955_v25 = vadd.f32 1.0, %v939_v30  ;;  %v940_v37 = vmul.f32 0.3275911, %v924_v33 }
 0x27e   :  { %v1165_v31 = vmul.f32 %v1149_v23, %v925_v2  ;;  %2063 = vpow2.f32 %v1177_v36  ;;  %v957_v47 = vadd.f32 1.0, %v941_v17  ;;  %v1148_v46 = vsub.f32 0.0, %v924_v33 }
 0x27f   :  { %2065 = vrcp.f32 %v954_v39  ;;  %v1183_v49 = vmul.f32 1.442695, %v1163_v42  ;;  %v926_v55 = vmax.f32 %v2778_v6, %v910_v13  ;;  %v2793_v0 = vmul.f32 0.5, %v2706_v4 }
 0x280   :  { %2067 = vpow2.f32 %v1181_v21  ;;  %v2796_v57 = vmul.f32 0.70710677, %v2785_v20  ;;  %v1187_v62 = vmul.f32 1.442695, %v1165_v31  ;;  %v956_v63 = vadd.f32 1.0, %v940_v37 }
 0x281   :  { %2069 = vrcp.f32 %v955_v25  ;;  %v1164_v3 = vmul.f32 %v1148_v46, %v924_v33  ;;  %v1150_v4 = vsub.f32 0.0, %v926_v55  ;;  %v2803_v22 = vadd.f32 %v2735_v41, %v2697_v43 }
 0x282   :  { %v2782_v12 = vpop.eup %2053  ;;  %2071 = vrcp.f32 %v957_v47  ;;  %v911_v10 = vsub.f32 0.0, %v2796_v57  ;;  %v942_v2 = vmul.f32 0.3275911, %v926_v55  ;;  %v2808_v16 = vadd.f32 %v2745_v48, %v2700_v1 }
 0x283   :  { %v2787_v61 = vpop.eup %2055  ;;  %v999_v29 = vmul.f32 1.0614054, %v2782_v12  ;;  %2073 = vpow2.f32 %v1183_v49  ;;  %3132 = vst [vmem:[#allocation5_spill] sm:$0xff] %v2803_v22  ;;  %v2812_v17 = vmul.f32 0.5, %v2709_v5  ;;  %v2815_v23 = vmul.f32 0.70710677, %v2803_v22 }
 0x284   :  { %v1001_v7 = vmul.f32 1.0614054, %v2787_v61  ;;  %v2058_v18 = vpop.eup %2057  ;;  %v927_v30 = vmax.f32 %v2796_v57, %v911_v10  ;;  %2075 = vpow2.f32 %v1187_v62  ;;  %v1185_v42 = vmul.f32 1.442695, %v1164_v3 }
 0x285   :  { %v1569_v52 = vadd.f32 -1.4531521, %v999_v29  ;;  %v2060_v36 = vpop.eup %2059  ;;  %3133 = vst [vmem:[#allocation6_spill] sm:$0xff] %v2815_v23  ;;  %v2822_v48 = vadd.f32 %v2747_v44, %v2703_v28  ;;  %v1166_v29 = vmul.f32 %v1150_v4, %v926_v55  ;;  %v913_v25 = vsub.f32 0.0, %v2815_v23 }
 0x286   :  { %v1571_v54 = vadd.f32 -1.4531521, %v1001_v7  ;;  %v2817_v41 = vpop.eup %2061  ;;  %v1151_v13 = vsub.f32 0.0, %v927_v30  ;;  %v2826_v5 = vmul.f32 0.70710677, %v2808_v16  ;;  %2077 = vrcp.f32 %v956_v63 }
 0x287   :  { %v1031_v35 = vmul.f32 %v2782_v12, %v1569_v52  ;;  %v958_v7 = vadd.f32 1.0, %v942_v2  ;;  %v943_v47 = vmul.f32 0.3275911, %v927_v30  ;;  %v929_v44 = vmax.f32 %v2815_v23, %v913_v25 }
 0x288   :  { %v1033_v34 = vmul.f32 %v2787_v61, %v1571_v54  ;;  %v2828_v31 = vpop.eup %2063  ;;  %v1167_v49 = vmul.f32 %v1151_v13, %v927_v30  ;;  %v912_v55 = vsub.f32 0.0, %v2826_v5  ;;  %v2839_v62 = vmul.f32 0.5, %v2712_v45 }
 0x289   :  { %v1047_v14 = vadd.f32 1.4214138, %v1031_v35  ;;  %v2830_v46 = vpop.eup %2065  ;;  %2079 = vpow2.f32 %v1185_v42  ;;  %v2842_v63 = vmul.f32 0.70710677, %v2822_v48  ;;  %v1189_v10 = vmul.f32 1.442695, %v1166_v29 }
 0x28a   :  { %v1049_v27 = vadd.f32 1.4214138, %v1033_v34  ;;  %v2835_v54 = vpop.eup %2067  ;;  %v928_v4 = vmax.f32 %v2826_v5, %v912_v55  ;;  %2081 = vrcp.f32 %v958_v7  ;;  %v945_v30 = vmul.f32 0.3275911, %v929_v44 }
 0x28b   :  { %v1063_v33 = vmul.f32 %v2782_v12, %v1047_v14  ;;  %v2844_v34 = vpop.eup %2069  ;;  %v1153_v14 = vsub.f32 0.0, %v929_v44  ;;  %v959_v42 = vadd.f32 1.0, %v943_v47  ;;  %v1191_v13 = vmul.f32 1.442695, %v1167_v49 }
 0x28c   :  { %v1065_v39 = vmul.f32 %v2787_v61, %v1049_v27  ;;  %v2847_v27 = vpop.eup %2071  ;;  %v1152_v29 = vsub.f32 0.0, %v928_v4  ;;  %2083 = vpow2.f32 %v1189_v10  ;;  %v961_v49 = vadd.f32 1.0, %v945_v30 }
 0x28d   :  { %v1585_v21 = vadd.f32 -0.28449672, %v1063_v33  ;;  %v914_v33 = vsub.f32 0.0, %v2842_v63  ;;  %v2850_v45 = vpop.eup %2073  ;;  %vm1239_vm0 = vcmp.ge.f32.partialorder %v2718_v38, 0.0  ;;  %2085 = vrcp.f32 %v959_v42 }
 0x28e   :  { %v1587_v37 = vadd.f32 -0.28449672, %v1065_v39  ;;  %v2859_v7 = vpop.eup %2075  ;;  %vm1241_vm1 = vcmp.ge.f32.partialorder %v2721_v59, 0.0  ;;  %2087 = vpow2.f32 %v1191_v13  ;;  %v2897_v38 = vmul.f32 0.5, %v2750_v9 }
 0x28f   :  { %v1095_v52 = vmul.f32 %v2782_v12, %v1585_v21  ;;  %v1169_v21 = vmul.f32 %v1153_v14, %v929_v44  ;;  %v1168_v44 = vmul.f32 %v1152_v29, %v928_v4  ;;  %2089 = vrcp.f32 %v961_v49 }
 0x290   :  { %v1097_v35 = vmul.f32 %v2787_v61, %v1587_v37  ;;  %v930_v37 = vmax.f32 %v2842_v63, %v914_v33  ;;  %v2920_v59 = vmul.f32 0.5, %v2808_v16  ;;  %vm1240_vm2 = vcmp.ge.f32.partialorder %v2724_v11, 0.0 }
 0x291   :  { %v1111_v3 = vadd.f32 0.2548296, %v1095_v52  ;;  %v2857_v52 = vadd.f32 %v2752_v50, %v2694_v26  ;;  %v2868_v26 = vpop.eup %2077  ;;  %v1193_v30 = vmul.f32 1.442695, %v1168_v44  ;;  %vm1242_vm3 = vcmp.ge.f32.partialorder %v2727_v32, 0.0 }
 0x292   :  { %v1113_v2 = vadd.f32 0.2548296, %v1097_v35  ;;  %v2862_v35 = vmul.f32 0.5, %v2715_v40  ;;  %v1195_v40 = vmul.f32 1.442695, %v1169_v21  ;;  %v2883_v21 = vadd.f32 %v2756_v53, %v2700_v1 }
 0x293   :  { %v1127_v39 = vmul.f32 %v2782_v12, %v1111_v3  ;;  %3134 = vst [vmem:[#allocation7_spill] sm:$0xff] %v2857_v52  ;;  %v944_v12 = vmul.f32 0.3275911, %v928_v4  ;;  %v1154_v3 = vsub.f32 0.0, %v930_v37  ;;  %v2866_v14 = vmul.f32 0.70710677, %v2857_v52 }
 0x294   :  { %v1129_v25 = vmul.f32 %v2787_v61, %v1113_v2  ;;  %v2872_v2 = vpop.eup %2079  ;;  %3137 = vst [vmem:[#allocation10_spill] sm:$0xff] %v2883_v21  ;;  %2091 = vpow2.f32 %v1195_v40  ;;  %v2908_v9 = vmul.f32 0.70710677, %v2883_v21  ;;  %v1002_v40 = vmul.f32 1.0614054, %v2830_v46 }
 0x295   :  { %v1207_v55 = vmul.f32 %v2058_v18, %v1127_v39  ;;  %3135 = vst [vmem:[#allocation8_spill] sm:$0xff] %v2866_v14  ;;  %v960_v10 = vadd.f32 1.0, %v944_v12  ;;  %v915_v4 = vsub.f32 0.0, %v2866_v14  ;;  %v1170_v33 = vmul.f32 %v1154_v3, %v930_v37  ;;  %v2885_v29 = vpop.eup %2081 }
 0x296   :  { %v1209_v47 = vmul.f32 %v2060_v36, %v1129_v25  ;;  %v946_v36 = vmul.f32 0.3275911, %v930_v37  ;;  %v2876_v39 = vadd.f32 %v2754_v51, %v2697_v43  ;;  %v2891_v37 = vmul.f32 0.5, %v2743_v24  ;;  %3139 = vst [vmem:[#allocation12_spill] sm:$0xff] %v2908_v9 }
 0x297   :  { %v1223_v61 = vsub.f32 1.0, %v1207_v55  ;;  %v931_v13 = vmax.f32 %v2866_v14, %v915_v4  ;;  %v2888_v55 = vmul.f32 0.5, %v2739_v8  ;;  %v2900_v51 = vmul.f32 0.5, %v2765_v58 }
 0x298   :  { %v1225_v50 = vsub.f32 1.0, %v1209_v47  ;;  %3136 = vst [vmem:[#allocation9_spill] sm:$0xff] %v2876_v39  ;;  %v2894_v43 = vmul.f32 0.70710677, %v2876_v39  ;;  %2093 = vrcp.f32 %v960_v10  ;;  %v962_v1 = vadd.f32 1.0, %v946_v36  ;;  %v2903_v47 = vpop.eup %2083 }
 0x299   :  { %v1255_v18 = vsub.f32 0.0, %v1223_v61  ;;  %2095 = vpow2.f32 %v1193_v30  ;;  %v1197_v12 = vmul.f32 1.442695, %v1170_v33  ;;  %v947_v49 = vmul.f32 0.3275911, %v931_v13 }
 0x29a   :  { %v1257_v25 = vsub.f32 0.0, %v1225_v50  ;;  %3138 = vst [vmem:[#allocation11_spill] sm:$0xff] %v2894_v43  ;;  %v917_v8 = vsub.f32 0.0, %v2894_v43  ;;  %v1155_v44 = vsub.f32 0.0, %v931_v13  ;;  %v2913_v3 = vadd.f32 %v2767_v15, %v2703_v28 }
 0x29b   :  { %v1271_v42 = vsel %vm1239_vm0, %v1223_v61, %v1255_v18  ;;  %v1000_v61 = vmul.f32 1.0614054, %v2817_v41  ;;  %v2917_v18 = vpop.eup %2085  ;;  %2097 = vrcp.f32 %v962_v1  ;;  %v916_v10 = vsub.f32 0.0, %v2908_v9 }
 0x29c   :  { %v1287_v53 = vadd.f32 1.0, %v1271_v42  ;;  %v1273_v24 = vsel %vm1241_vm1, %v1225_v50, %v1257_v25  ;;  %v933_v58 = vmax.f32 %v2894_v43, %v917_v8  ;;  %3140 = vst [vmem:[#allocation13_spill] sm:$0xff] %v2913_v3  ;;  %v2923_v50 = vmul.f32 0.5, %v2822_v48  ;;  %v2926_v36 = vpop.eup %2087 }
 0x29d   :  { %v1289_v4 = vadd.f32 1.0, %v1273_v24  ;;  %v2929_v30 = vmul.f32 0.70710677, %v2913_v3  ;;  %2099 = vpow2.f32 %v1197_v12  ;;  %v932_v33 = vmax.f32 %v2908_v9, %v916_v10  ;;  %v2932_v25 = vpop.eup %2089 }
 0x29e   :  { %v949_v28 = vmul.f32 0.3275911, %v933_v58  ;;  %v1157_v15 = vsub.f32 0.0, %v933_v58  ;;  %v1570_v42 = vadd.f32 -1.4531521, %v1000_v61  ;;  %v2935_v48 = vmul.f32 %v1287_v53, %v2793_v0  ;;  %v2940_v12 = vpop.eup %2091 }
 0x29f   :  { %3141 = vst [vmem:[#allocation14_spill] sm:$0xff] %v2929_v30  ;;  %v1572_v16 = vadd.f32 -1.4531521, %v1002_v40  ;;  %v963_v1 = vadd.f32 1.0, %v947_v49  ;;  %v1171_v8 = vmul.f32 %v1155_v44, %v931_v13  ;;  %v918_v39 = vsub.f32 0.0, %v2929_v30 }
 0x2a0   :  { %v1173_v24 = vmul.f32 %v1157_v15, %v933_v58  ;;  %v1156_v52 = vsub.f32 0.0, %v932_v33  ;;  %v1032_v43 = vmul.f32 %v2817_v41, %v1570_v42  ;;  %v2943_v61 = vmul.f32 %v1289_v4, %v2812_v17 }
 0x2a1   :  { %v1034_v14 = vmul.f32 %v2830_v46, %v1572_v16  ;;  %v965_v40 = vadd.f32 1.0, %v949_v28  ;;  %v934_v10 = vmax.f32 %v2929_v30, %v918_v39  ;;  %v1004_v0 = vmul.f32 1.0614054, %v2868_v26 }
 0x2a2   :  { %v2947_v53 = vpop.eup %2093  ;;  %v948_v13 = vmul.f32 0.3275911, %v932_v33  ;;  %v1172_v49 = vmul.f32 %v1156_v52, %v932_v33  ;;  %v1048_v44 = vadd.f32 1.4214138, %v1032_v43  ;;  %2101 = vrcp.f32 %v963_v1 }
 0x2a3   :  { %v1050_v58 = vadd.f32 1.4214138, %v1034_v14  ;;  %v2949_v15 = vpop.eup %2095  ;;  %v950_v42 = vmul.f32 0.3275911, %v934_v10  ;;  %v1158_v16 = vsub.f32 0.0, %v934_v10  ;;  %2103 = vrcp.f32 %v965_v40 }
 0x2a4   :  { %v1574_v3 = vadd.f32 -1.4531521, %v1004_v0  ;;  %v2951_v21 = vmul.f32 1.442695, %v1171_v8  ;;  %v2953_v17 = vmul.f32 1.442695, %v1173_v24  ;;  %v1064_v39 = vmul.f32 %v2817_v41, %v1048_v44 }
 0x2a5   :  { %v1066_v4 = vmul.f32 %v2830_v46, %v1050_v58  ;;  %v2957_v28 = vmul.f32 1.442695, %v1172_v49  ;;  %v1174_v30 = vmul.f32 %v1158_v16, %v934_v10  ;;  %v1006_v14 = vmul.f32 1.0614054, %v2885_v29  ;;  %v2961_v43 = vpop.eup %2097 }
 0x2a6   :  { %v1036_v52 = vmul.f32 %v2868_v26, %v1574_v3  ;;  %v1586_v33 = vadd.f32 -0.28449672, %v1064_v39  ;;  %v1003_v8 = vmul.f32 1.0614054, %v2844_v34  ;;  %v964_v24 = vadd.f32 1.0, %v948_v13 }
 0x2a7   :  { %v1588_v1 = vadd.f32 -0.28449672, %v1066_v4  ;;  %v966_v0 = vadd.f32 1.0, %v950_v42  ;;  %v1576_v44 = vadd.f32 -1.4531521, %v1006_v14  ;;  %v2964_v22 = vpop.eup %2099  ;;  %vm1244_vm4 = vcmp.ge.f32.partialorder %v2771_v60, 0.0 }
 0x2a8   :  { %v1052_v9 = vadd.f32 1.4214138, %v1036_v52  ;;  %v1096_v49 = vmul.f32 %v2817_v41, %v1586_v33  ;;  %v1573_v3 = vadd.f32 -1.4531521, %v1003_v8  ;;  %v1005_v58 = vmul.f32 1.0614054, %v2847_v27 }
 0x2a9   :  { %v1098_v10 = vmul.f32 %v2830_v46, %v1588_v1  ;;  %v2969_v16 = vmul.f32 1.442695, %v1174_v30  ;;  %v1038_v39 = vmul.f32 %v2885_v29, %v1576_v44  ;;  %v1008_v13 = vmul.f32 1.0614054, %v2947_v53 }
 0x2aa   :  { %v1068_v40 = vmul.f32 %v2868_v26, %v1052_v9  ;;  %v1112_v42 = vadd.f32 0.2548296, %v1096_v49  ;;  %v1035_v52 = vmul.f32 %v2844_v34, %v1573_v3  ;;  %v1575_v14 = vadd.f32 -1.4531521, %v1005_v58 }
 0x2ab   :  { %v1114_v4 = vadd.f32 0.2548296, %v1098_v10  ;;  %2105 = vrcp.f32 %v964_v24  ;;  %v1054_v1 = vadd.f32 1.4214138, %v1038_v39  ;;  %v1578_v30 = vadd.f32 -1.4531521, %v1008_v13 }
 0x2ac   :  { %v1590_v33 = vadd.f32 -0.28449672, %v1068_v40  ;;  %v1128_v8 = vmul.f32 %v2817_v41, %v1112_v42  ;;  %v1051_v44 = vadd.f32 1.4214138, %v1035_v52  ;;  %v1037_v23 = vmul.f32 %v2847_v27, %v1575_v14  ;;  %v2980_v49 = vpop.eup %2101 }
 0x2ad   :  { %v1130_v9 = vmul.f32 %v2830_v46, %v1114_v4  ;;  %v1070_v3 = vmul.f32 %v2885_v29, %v1054_v1  ;;  %v1040_v58 = vmul.f32 %v2947_v53, %v1578_v30  ;;  %v1010_v24 = vmul.f32 1.0614054, %v2961_v43  ;;  %v2989_v52 = vpop.eup %2103 }
 0x2ae   :  { %v1100_v10 = vmul.f32 %v2868_v26, %v1590_v33  ;;  %v1208_v40 = vmul.f32 %v2828_v31, %v1128_v8  ;;  %v1067_v41 = vmul.f32 %v2844_v34, %v1051_v44  ;;  %v1053_v46 = vadd.f32 1.4214138, %v1037_v23 }
 0x2af   :  { %v1210_v39 = vmul.f32 %v2835_v54, %v1130_v9  ;;  %2107 = vrcp.f32 %v966_v0  ;;  %v1592_v42 = vadd.f32 -0.28449672, %v1070_v3  ;;  %v1056_v4 = vadd.f32 1.4214138, %v1040_v58 }
 0x2b0   :  { %v1116_v13 = vadd.f32 0.2548296, %v1100_v10  ;;  %v1224_v14 = vsub.f32 1.0, %v1208_v40  ;;  %v1589_v1 = vadd.f32 -0.28449672, %v1067_v41  ;;  %v1069_v30 = vmul.f32 %v2847_v27, %v1053_v46 }
 0x2b1   :  { %v1226_v33 = vsub.f32 1.0, %v1210_v39  ;;  %v1102_v54 = vmul.f32 %v2885_v29, %v1592_v42  ;;  %v1072_v8 = vmul.f32 %v2947_v53, %v1056_v4  ;;  %v1580_v23 = vadd.f32 -1.4531521, %v1010_v24 }
 0x2b2   :  { %v1132_v31 = vmul.f32 %v2868_v26, %v1116_v13  ;;  %v1256_v0 = vsub.f32 0.0, %v1224_v14  ;;  %v1099_v44 = vmul.f32 %v2844_v34, %v1589_v1  ;;  %v1591_v10 = vadd.f32 -0.28449672, %v1069_v30 }
 0x2b3   :  { %v1258_v9 = vsub.f32 0.0, %v1226_v33  ;;  %v1118_v58 = vadd.f32 0.2548296, %v1102_v54  ;;  %v1594_v40 = vadd.f32 -0.28449672, %v1072_v8  ;;  %v1042_v39 = vmul.f32 %v2961_v43, %v1580_v23 }
 0x2b4   :  { %v1212_v3 = vmul.f32 %v2872_v2, %v1132_v31  ;;  %vm1246_vm5 = vcmp.ge.f32.partialorder %v2778_v6, 0.0  ;;  %v1272_v26 = vsel %vm1240_vm2, %v1224_v14, %v1256_v0  ;;  %v1115_v24 = vadd.f32 0.2548296, %v1099_v44 }
 0x2b5   :  { %v1274_v41 = vsel %vm1242_vm3, %v1226_v33, %v1258_v9  ;;  %v1101_v46 = vmul.f32 %v2847_v27, %v1591_v10  ;;  %v3005_v13 = vpop.eup %2105  ;;  %vm1243_vm6 = vcmp.ge.f32.partialorder %v2759_v56, 0.0  ;;  %v1288_v2 = vadd.f32 1.0, %v1272_v26 }
 0x2b6   :  { %v1290_v42 = vadd.f32 1.0, %v1274_v41  ;;  %v1228_v4 = vsub.f32 1.0, %v1212_v3  ;;  %v1134_v1 = vmul.f32 %v2885_v29, %v1118_v58  ;;  %v1131_v30 = vmul.f32 %v2844_v34, %v1115_v24 }
 0x2b7   :  { %v1117_v31 = vadd.f32 0.2548296, %v1101_v46  ;;  %v1104_v11 = vmul.f32 %v2947_v53, %v1594_v40  ;;  %v1058_v14 = vadd.f32 1.4214138, %v1042_v39  ;;  %vm1245_vm7 = vcmp.ge.f32.partialorder %v2762_v19, 0.0 }
 0x2b8   :  { %v1304_v32 = vmul.f32 %v1288_v2, %v2839_v62  ;;  %v1306_v33 = vmul.f32 %v1290_v42, %v2862_v35  ;;  %v1260_v54 = vsub.f32 0.0, %v1228_v4  ;;  %v1214_v8 = vmul.f32 %v2903_v47, %v1134_v1 }
 0x2b9   :  { %v1211_v23 = vmul.f32 %v2850_v45, %v1131_v30  ;;  %v1133_v0 = vmul.f32 %v2847_v27, %v1117_v31  ;;  %v1120_v29 = vadd.f32 0.2548296, %v1104_v11  ;;  %v1074_v34 = vmul.f32 %v2961_v43, %v1058_v14  ;;  %v3018_v9 = vpop.eup %2107 }
 0x2ba   :  { %vm1248_vm8 = vcmp.ge.f32.partialorder %v2826_v5, 0.0  ;;  %1454 = vmatprep.mubr.f32.mxu0 %v1304_v32  ;;  %1539 = vmatprep.mubr.f32.mxu1 %v1306_v33  ;;  %v1276_v62 = vsel %vm1244_vm4, %v1228_v4, %v1260_v54  ;;  %v1230_v35 = vsub.f32 1.0, %v1214_v8  ;;  %v1007_v44 = vmul.f32 1.0614054, %v2917_v18 }
 0x2bb   :  { %v1009_v47 = vmul.f32 1.0614054, %v2932_v25  ;;  %1455 = vmatmul.mubr.f32.vlgmr.msra.gmra.mrb[8].mxu0 %v2935_v48  ;;  %1540 = vmatmul.mubr.f32.vlgmr.msra.gmra.mrb[8].mxu1 %v2943_v61  ;;  %v1292_v27 = vadd.f32 1.0, %v1276_v62  ;;  %v1227_v45 = vsub.f32 1.0, %v1211_v23  ;;  %v1213_v10 = vmul.f32 %v2859_v7, %v1133_v0 }
 0x2bc   :  { %v1136_v3 = vmul.f32 %v2947_v53, %v1120_v29  ;;  %2109 = vpow2.f32 %v2951_v21  ;;  %v1262_v58 = vsub.f32 0.0, %v1230_v35  ;;  %v1596_v60 = vadd.f32 -0.28449672, %v1074_v34 }
 0x2bd   :  { %v1577_v40 = vadd.f32 -1.4531521, %v1007_v44  ;;  %v1308_v39 = vmul.f32 %v1292_v27, %v2897_v38  ;;  %v1259_v26 = vsub.f32 0.0, %v1227_v45  ;;  %v1229_v41 = vsub.f32 1.0, %v1213_v10 }
 0x2be   :  { %v1216_v24 = vmul.f32 %v2949_v15, %v1136_v3  ;;  %v1278_v48 = vsel %vm1246_vm5, %v1230_v35, %v1262_v58  ;;  %v1106_v61 = vmul.f32 %v2961_v43, %v1596_v60  ;;  %v1579_v46 = vadd.f32 -1.4531521, %v1009_v47 }
 0x2bf   :  { %v1039_v7 = vmul.f32 %v2917_v18, %v1577_v40  ;;  %1459 = vmatprep.mubr.f32.mxu0 %v1308_v39  ;;  %v1294_v53 = vadd.f32 1.0, %v1278_v48  ;;  %v1275_v21 = vsel %vm1243_vm6, %v1227_v45, %v1259_v26  ;;  %v1261_v2 = vsub.f32 0.0, %v1229_v41 }
 0x2c0   :  { %v1232_v42 = vsub.f32 1.0, %v1216_v24  ;;  %v1291_v38 = vadd.f32 1.0, %v1275_v21  ;;  %v1122_v4 = vadd.f32 0.2548296, %v1106_v61  ;;  %v1041_v15 = vmul.f32 %v2932_v25, %v1579_v46 }
 0x2c1   :  { %v1055_v1 = vadd.f32 1.4214138, %v1039_v7  ;;  %vm1250_vm9 = vcmp.ge.f32.partialorder %v2842_v63, 0.0  ;;  %v1310_v6 = vmul.f32 %v1294_v53, %v2900_v51  ;;  %v1277_v30 = vsel %vm1245_vm7, %v1229_v41, %v1261_v2 }
 0x2c2   :  { %v1264_v31 = vsub.f32 0.0, %v1232_v42  ;;  %v1012_v11 = vmul.f32 1.0614054, %v3005_v13  ;;  %v1307_v56 = vmul.f32 %v1291_v38, %v2888_v55  ;;  %v1293_v14 = vadd.f32 1.0, %v1277_v30 }
 0x2c3   :  { %v1138_v32 = vmul.f32 %v2961_v43, %v1122_v4  ;;  %v1071_v33 = vmul.f32 %v2917_v18, %v1055_v1  ;;  %1544 = vmatprep.mubr.f32.mxu1 %v1310_v6  ;;  %v1057_v8 = vadd.f32 1.4214138, %v1041_v15  ;;  %v1014_v51 = vmul.f32 1.0614054, %v3018_v9 }
 0x2c4   :  { %v1280_v54 = vsel %vm1248_vm8, %v1232_v42, %v1264_v31  ;;  %v1582_v23 = vadd.f32 -1.4531521, %v1012_v11  ;;  %1460 = vmatmul.mubr.f32.gmra.mrb[10].mxu0 %v1307_v56  ;;  %v1309_v19 = vmul.f32 %v1293_v14, %v2891_v37  ;;  %v1011_v35 = vmul.f32 1.0614054, %v2980_v49 }
 0x2c5   :  { %v1296_v0 = vadd.f32 1.0, %v1280_v54  ;;  %v1218_v29 = vmul.f32 %v2964_v22, %v1138_v32  ;;  %v1593_v55 = vadd.f32 -0.28449672, %v1071_v33  ;;  %v1073_v34 = vmul.f32 %v2932_v25, %v1057_v8 }
 0x2c6   :  { %v1044_v43 = vmul.f32 %v3005_v13, %v1582_v23  ;;  %v1584_v62 = vadd.f32 -1.4531521, %v1014_v51  ;;  %v3055_v5 = vpop.eup %2109  ;;  %1545 = vmatmul.mubr.f32.gmra.mrb[10].mxu1 %v1309_v19  ;;  %v1013_v37 = vmul.f32 1.0614054, %v2989_v52  ;;  %v1581_v3 = vadd.f32 -1.4531521, %v1011_v35 }
 0x2c7   :  { %v1312_v44 = vmul.f32 %v1296_v0, %v2920_v59  ;;  %v1234_v47 = vsub.f32 1.0, %v1218_v29  ;;  %v1103_v27 = vmul.f32 %v2917_v18, %v1593_v55  ;;  %v1595_v45 = vadd.f32 -0.28449672, %v1073_v34  ;;  %v3142_v29 = vld [vmem:[#allocation6_spill] sm:$0xff]  ;;  %v3143_v35 = vld [vmem:[#allocation5_spill] sm:$0xff] }
 0x2c8   :  { %v1060_v22 = vadd.f32 1.4214138, %v1044_v43  ;;  %v1046_v10 = vmul.f32 %v3018_v9, %v1584_v62  ;;  %2111 = vpow2.f32 %v2957_v28  ;;  %v1583_v40 = vadd.f32 -1.4531521, %v1013_v37 }
 0x2c9   :  { %1464 = vmatprep.mubr.f32.mxu0 %v1312_v44  ;;  %v1266_v58 = vsub.f32 0.0, %v1234_v47  ;;  %v1119_v60 = vadd.f32 0.2548296, %v1103_v27  ;;  %v1105_v39 = vmul.f32 %v2932_v25, %v1595_v45  ;;  %v1043_v41 = vmul.f32 %v2980_v49, %v1581_v3 }
 0x2ca   :  { %v1076_v59 = vmul.f32 %v3005_v13, %v1060_v22  ;;  %v1062_v26 = vadd.f32 1.4214138, %v1046_v10  ;;  %2113 = vpow2.f32 %v2969_v16  ;;  %v1045_v28 = vmul.f32 %v2989_v52, %v1583_v40  ;;  %v3144_v22 = vld [vmem:[#allocation12_spill] sm:$0xff] }
 0x2cb   :  { %v1282_v24 = vsel %vm1250_vm9, %v1234_v47, %v1266_v58  ;;  %v1135_v48 = vmul.f32 %v2917_v18, %v1119_v60  ;;  %v1121_v7 = vadd.f32 0.2548296, %v1105_v39  ;;  %2115 = vpow2.f32 %v2953_v17  ;;  %v3145_v60 = vld [vmem:[#allocation10_spill] sm:$0xff] }
 0x2cc   :  { %v1298_v61 = vadd.f32 1.0, %v1282_v24  ;;  %v1598_v46 = vadd.f32 -0.28449672, %v1076_v59  ;;  %v1078_v53 = vmul.f32 %v3018_v9, %v1062_v26  ;;  %v1059_v2 = vadd.f32 1.4214138, %v1043_v41  ;;  %v3146_v26 = vld [vmem:[#allocation14_spill] sm:$0xff] }
 0x2cd   :  { %v1215_v21 = vmul.f32 %v2926_v36, %v1135_v48  ;;  %v1061_v42 = vadd.f32 1.4214138, %v1045_v28  ;;  %v1137_v63 = vmul.f32 %v2932_v25, %v1121_v7  ;;  %vm1247_vm10 = vcmp.ge.f32.partialorder %v2796_v57, 0.0 }
 0x2ce   :  { %v1314_v16 = vmul.f32 %v1298_v61, %v2923_v50  ;;  %v1108_v38 = vmul.f32 %v3005_v13, %v1598_v46  ;;  %v1600_v18 = vadd.f32 -0.28449672, %v1078_v53  ;;  %v1075_v1 = vmul.f32 %v2980_v49, %v1059_v2 }
 0x2cf   :  { %v1231_v4 = vsub.f32 1.0, %v1215_v21  ;;  %v1077_v15 = vmul.f32 %v2989_v52, %v1061_v42  ;;  %v1217_v6 = vmul.f32 %v2940_v12, %v1137_v63  ;;  %v879_v32 = vmul.f32 0.5, %v2785_v20  ;;  %v3148_v21 = vld [vmem:[#allocation8_spill] sm:$0xff]  ;;  %v3150_v63 = vld [vmem:[#allocation7_spill] sm:$0xff] }
 0x2d0   :  { %1549 = vmatprep.mubr.f32.mxu1 %v1314_v16  ;;  %v1124_v17 = vadd.f32 0.2548296, %v1108_v38  ;;  %v1110_v36 = vmul.f32 %v3018_v9, %v1600_v18  ;;  %v1597_v31 = vadd.f32 -0.28449672, %v1075_v1  ;;  %vm1249_vm11 = vcmp.ge.f32.partialorder %v3142_v29, 0.0  ;;  %v3151_v18 = vld [vmem:[#allocation9_spill] sm:$0xff] }
 0x2d1   :  { %v1263_v30 = vsub.f32 0.0, %v1231_v4  ;;  %v1599_v11 = vadd.f32 -0.28449672, %v1077_v15  ;;  %v1233_v50 = vsub.f32 1.0, %v1217_v6  ;;  %v881_v44 = vmul.f32 0.5, %v3143_v35 }
 0x2d2   :  { %v1140_v25 = vmul.f32 %v3005_v13, %v1124_v17  ;;  %v1126_v56 = vadd.f32 0.2548296, %v1110_v36  ;;  %v2112_v14 = vpop.eup %2111  ;;  %v1107_v54 = vmul.f32 %v2980_v49, %v1597_v31  ;;  %vm1252_vm12 = vcmp.ge.f32.partialorder %v3144_v22, 0.0  ;;  %v1601_v31 = vld [vmem:[%s3120_s6] ss:$0 sm:$0xff] }
 0x2d3   :  { %v1279_v33 = vsel %vm1247_vm10, %v1231_v4, %v1263_v30  ;;  %v1109_v12 = vmul.f32 %v2989_v52, %v1599_v11  ;;  %v1265_v23 = vsub.f32 0.0, %v1233_v50  ;;  %v884_v40 = vmul.f32 0.5, %v3145_v60 }
 0x2d4   :  { %v1295_v8 = vadd.f32 1.0, %v1279_v33  ;;  %v1220_v51 = vmul.f32 %v2112_v14, %v1140_v25  ;;  %v1142_v19 = vmul.f32 %v3018_v9, %v1126_v56  ;;  %v2114_v0 = vpop.eup %2113  ;;  %v1123_v57 = vadd.f32 0.2548296, %v1107_v54 }
 0x2d5   :  { %v1125_v55 = vadd.f32 0.2548296, %v1109_v12  ;;  %v1281_v34 = vsel %vm1249_vm11, %v1233_v50, %v1265_v23  ;;  %v2116_v20 = vpop.eup %2115  ;;  %vm1254_vm13 = vcmp.ge.f32.partialorder %v3146_v26, 0.0  ;;  %vm1251_vm14 = vcmp.ge.f32.partialorder %v3148_v21, 0.0 }
 0x2d6   :  { %v1311_v13 = vmul.f32 %v1295_v8, %v879_v32  ;;  %v1236_v43 = vsub.f32 1.0, %v1220_v51  ;;  %v1222_v62 = vmul.f32 %v2114_v0, %v1142_v19  ;;  %v1297_v47 = vadd.f32 1.0, %v1281_v34 }
 0x2d7   :  { %v1139_v27 = vmul.f32 %v2980_v49, %v1123_v57  ;;  %v1141_v37 = vmul.f32 %v2989_v52, %v1125_v55  ;;  %v3147_v52 = vld [vmem:[#allocation13_spill] sm:$0xff]  ;;  %v883_v38 = vmul.f32 0.5, %v3150_v63  ;;  %v885_v4 = vmul.f32 0.5, %v3151_v18 }
 0x2d8   :  { %1465 = vmatmul.mubr.f32.gmra.mrb[12].mxu0 %v1311_v13  ;;  %v1268_v45 = vsub.f32 0.0, %v1236_v43  ;;  %v1238_v9 = vsub.f32 1.0, %v1222_v62  ;;  %v1313_v10 = vmul.f32 %v1297_v47, %v881_v44  ;;  %v886_v48 = vmul.f32 0.5, %v3147_v52 }
 0x2d9   :  { %v1219_v3 = vmul.f32 %v3055_v5, %v1139_v27  ;;  %v1221_v58 = vmul.f32 %v2116_v20, %v1141_v37  ;;  %v3149_v5 = vld [vmem:[#allocation11_spill] sm:$0xff] }
 0x2da   :  { %v1284_v39 = vsel %vm1252_vm12, %v1236_v43, %v1268_v45  ;;  %v1270_v59 = vsub.f32 0.0, %v1238_v9  ;;  %1550 = vmatmul.mubr.f32.gmra.mrb[12].mxu1 %v1313_v10  ;;  %vm1253_vm15 = vcmp.ge.f32.partialorder %v3149_v5, 0.0 }
 0x2db   :  { %v1300_v41 = vadd.f32 1.0, %v1284_v39  ;;  %v1235_v49 = vsub.f32 1.0, %v1219_v3  ;;  %v1237_v24 = vsub.f32 1.0, %v1221_v58 }
 0x2dc   :  { %v1286_v28 = vsel %vm1254_vm13, %v1238_v9, %v1270_v59 }
 0x2dd   :  { %v1316_v61 = vmul.f32 %v1300_v41, %v884_v40  ;;  %v1302_v7 = vadd.f32 1.0, %v1286_v28  ;;  %v1267_v46 = vsub.f32 0.0, %v1235_v49  ;;  %v1269_v53 = vsub.f32 0.0, %v1237_v24 }
 0x2df   :  { %1469 = vmatprep.mubr.f32.mxu0 %v1316_v61  ;;  %v1318_v2 = vmul.f32 %v1302_v7, %v886_v48  ;;  %v1283_v42 = vsel %vm1251_vm14, %v1235_v49, %v1267_v46  ;;  %v1285_v16 = vsel %vm1253_vm15, %v1237_v24, %v1269_v53 }
 0x2e0   :  { %v1299_v1 = vadd.f32 1.0, %v1283_v42  ;;  %v1301_v15 = vadd.f32 1.0, %v1285_v16 }
 0x2e1   :  { %1554 = vmatprep.mubr.f32.mxu1 %v1318_v2 }
 0x2e2   :  { %v1315_v6 = vmul.f32 %v1299_v1, %v883_v38  ;;  %v1317_v17 = vmul.f32 %v1301_v15, %v885_v4 }
 0x2e4   :  { %1470 = vmatmul.mubr.f32.gmra.mrb[14].mxu0 %v1315_v6  ;;  %1555 = vmatmul.mubr.f32.gmra.mrb[14].mxu1 %v1317_v17 }
 0x38e   :  { %v1634_v36 = vpop.f32.mrb[8].mxu0  ;;  %v1678_v30 = vpop.f32.mrb[8].mxu1 }
 0x38f   :  { %v1635_v11 = vpop.f32.mrb[9].mxu0  ;;  %v1679_v50 = vpop.f32.mrb[9].mxu1 }
 0x390   :  { %v1636_v25 = vadd.f32 %v1635_v11, %v1634_v36  ;;  %v1680_v56 = vadd.f32 %v1679_v50, %v1678_v30 }
 0x392   :  { %v1457_v14 = vadd.f32 %v1636_v25, %v1601_v31 }
 0x394   :  { %v1542_v32 = vadd.f32 %v1680_v56, %v1457_v14 }
 0x396   :  { %1560 = vst [vmem:[%s3121_s7] sm:$0xff] %v1542_v32 }
 0x397   :  { %v1637_v33 = vpop.f32.mrb[10].mxu0 }
 0x398   :  { %v1638_v54 = vpop.f32.mrb[11].mxu0 }
 0x399   :  { %v1681_v12 = vpop.f32.mrb[10].mxu1  ;;  %v1639_v8 = vadd.f32 %v1638_v54, %v1637_v33 }
 0x39a   :  { %v1682_v23 = vpop.f32.mrb[11].mxu1 }
 0x39b   :  { %v1462_v51 = vadd.f32 %v1639_v8, %v1601_v31  ;;  %v1683_v19 = vadd.f32 %v1682_v23, %v1681_v12 }
 0x39d   :  { %v1547_v0 = vadd.f32 %v1683_v19, %v1462_v51 }
 0x39f   :  { %1561 = vst [vmem:[%s3121_s7 + $0x8] sm:$0xff] %v1547_v0 }
 0x3ab   :  { %v1640_v29 = vpop.f32.mrb[12].mxu0 }
 0x3ac   :  { %v1641_v57 = vpop.f32.mrb[13].mxu0 }
 0x3ad   :  { %v1642_v55 = vadd.f32 %v1641_v57, %v1640_v29  ;;  %v1684_v13 = vpop.f32.mrb[12].mxu1 }
 0x3ae   :  { %v1685_v43 = vpop.f32.mrb[13].mxu1 }
 0x3af   :  { %v1467_v34 = vadd.f32 %v1642_v55, %v1601_v31  ;;  %v1686_v62 = vadd.f32 %v1685_v43, %v1684_v13 }
 0x3b1   :  { %v1552_v20 = vadd.f32 %v1686_v62, %v1467_v34 }
 0x3b3   :  { %1562 = vst [vmem:[%s3121_s7 + $0x10] sm:$0xff] %v1552_v20 }
 0x3b7   :  { %v1643_v35 = vpop.f32.mrb[14].mxu0  ;;  %v1687_v44 = vpop.f32.mrb[14].mxu1 }
 0x3b8   :  { %v1644_v47 = vpop.f32.mrb[15].mxu0  ;;  %v1688_v27 = vpop.f32.mrb[15].mxu1 }
 0x3b9   :  { %v1645_v37 = vadd.f32 %v1644_v47, %v1643_v35  ;;  %v1689_v45 = vadd.f32 %v1688_v27, %v1687_v44 }
 0x3bb   :  { %v1472_v9 = vadd.f32 %v1645_v37, %v1601_v31 }
 0x3bd   :  { %v1557_v22 = vadd.f32 %v1689_v45, %v1472_v9 }
 0x3bf   :  { %1563 = vst [vmem:[%s3121_s7 + $0x18] sm:$0xff] %v1557_v22 }
 0x3c0   :  { %1568 = vsyncpa [#allocation3], 1 }

</bundles_post_ra>
